<compile_context>
chip_gen: v6e
topology: v6e:2x2x1
jax: 0.10.0
libtpu: 0.0.40
codegen_flags: <defaults>
</compile_context>

<pallas_src>
import functools
import math

import jax
import jax.numpy as jnp
from jax import lax
from jax.experimental import pallas as pl
from jax.experimental.pallas import tpu as pltpu


# ---------------------------------------------------------------------------
# Pallas kernels
# ---------------------------------------------------------------------------

def _apply_act(y, act):
    if act == "relu":
        return jnp.maximum(y, 0.0)
    if act == "mish":
        # mish(x) = x * tanh(softplus(x)); softplus thresholded at 20 like torch.
        sp = jnp.where(y > 20.0, y, jnp.log1p(jnp.exp(jnp.minimum(y, 20.0))))
        return y * jnp.tanh(sp)
    if act == "none":
        return y
    raise ValueError(f"unknown activation {act}")


def _conv_mm_kernel(x_ref, w_ref, b_ref, o_ref, acc_ref, *, tap_offsets, act):
    """Fused in-kernel-im2col conv-as-matmul.

    x_ref : (Mi, CI)  flattened (spatially padded) input rows, bf16
    w_ref : (T, CI, CO) per-tap weight slab, bf16
    b_ref : (1, CO)   folded-BN bias, f32
    o_ref : (Mo, CO)  flattened output rows
    acc   : (Mo, CO)  f32 accumulator, resident across the K (ci) grid axis
    """
    @pl.when(pl.program_id(2) == 0)
    def _init():
        acc_ref[...] = jnp.zeros_like(acc_ref)

    mo = acc_ref.shape[0]
    for t, off in enumerate(tap_offsets):
        acc_ref[...] += jnp.dot(x_ref[off:off + mo, :], w_ref[t],
                                preferred_element_type=jnp.float32)

    @pl.when(pl.program_id(2) == pl.num_programs(2) - 1)
    def _fin():
        y = _apply_act(acc_ref[...] + b_ref[...], act)
        o_ref[...] = y.astype(o_ref.dtype)


def _conv_mm_pool_kernel(x_ref, w_ref, b_ref, o_ref, pool_ref, acc_ref, *,
                         tap_offsets, act):
    """Same as _conv_mm_kernel plus a fused global-average-pool output
    (pre-activation) used as the SE squeeze of bottleneck conv3."""
    @pl.when(pl.program_id(2) == 0)
    def _init():
        acc_ref[...] = jnp.zeros_like(acc_ref)

    mo = acc_ref.shape[0]
    for t, off in enumerate(tap_offsets):
        acc_ref[...] += jnp.dot(x_ref[off:off + mo, :], w_ref[t],
                                preferred_element_type=jnp.float32)

    @pl.when(pl.program_id(2) == pl.num_programs(2) - 1)
    def _fin():
        yb = acc_ref[...] + b_ref[...]
        pool_ref[...] = jnp.mean(yb, axis=0, keepdims=True)
        o_ref[...] = _apply_act(yb, act).astype(o_ref.dtype)


def _se_scale_add_relu_kernel(x_ref, s_ref, r_ref, o_ref):
    # relu(x * se_scale + residual)  -- fused SE excitation + skip + ReLU
    x = x_ref[...].astype(jnp.float32)
    r = r_ref[...].astype(jnp.float32)
    o_ref[...] = jnp.maximum(x * s_ref[...] + r, 0.0).astype(o_ref.dtype)


# ---------------------------------------------------------------------------
# Pallas wrappers
# ---------------------------------------------------------------------------

def _pick_tile(c, candidates):
    for t in candidates:
        if c % t == 0:
            return t
    return c


@functools.partial(
    jax.jit, static_argnames=("tap_offsets", "mo", "act", "diag", "with_pool"))
def fused_conv(x, w, b, *, tap_offsets, mo, act, diag, with_pool):
    """act(conv(x) + b), in-kernel im2col, f32 accumulation.

    x : (N, Mi, Cx)  flattened rows, bf16
    w : (T, CK, Cout) bf16.  CK == Cx for dense convs; for grouped ("diag")
        convs CK is the per-output-tile block-diagonal K width.
    b : (1, Cout) f32
    """
    N, Mi, Cx = x.shape
    T, CK, Cout = w.shape
    assert T == len(tap_offsets)

    if diag:
        co_steps = Cx // CK          # one output tile per matching input block
        co_tile = Cout // co_steps
    else:
        co_tile = _pick_tile(Cout, (256, 128))
        co_steps = Cout // co_tile
    ci_tile = _pick_tile(CK, (512, 384, 256, 128))
    ci_steps = CK // ci_tile

    if diag:
        x_idx = lambda n, j, k: (n, 0, j * ci_steps + k)
    else:
        x_idx = lambda n, j, k: (n, 0, k)

    kern = functools.partial(
        _conv_mm_pool_kernel if with_pool else _conv_mm_kernel,
        tap_offsets=tap_offsets, act=act)

    out_shape = jax.ShapeDtypeStruct((N, mo, Cout), jnp.bfloat16)
    out_specs = pl.BlockSpec((None, mo, co_tile), lambda n, j, k: (n, 0, j))
    if with_pool:
        out_shape = (out_shape, jax.ShapeDtypeStruct((N, 1, Cout), jnp.float32))
        out_specs = (out_specs,
                     pl.BlockSpec((None, 1, co_tile), lambda n, j, k: (n, 0, j)))

    # TODO(synk): for large spatial inputs the M (row) axis should also be
    # tiled with row halos; at these shapes the full plane fits VMEM easily.
    return pl.pallas_call(
        kern,
        out_shape=out_shape,
        grid_spec=pltpu.PrefetchScalarGridSpec(
            num_scalar_prefetch=0,
            grid=(N, co_steps, ci_steps),
            in_specs=[
                pl.BlockSpec((None, Mi, ci_tile), x_idx),
                pl.BlockSpec((T, ci_tile, co_tile), lambda n, j, k: (0, k, j)),
                pl.BlockSpec((1, co_tile), lambda n, j, k: (0, j)),
            ],
            out_specs=out_specs,
            scratch_shapes=[pltpu.VMEM((mo, co_tile), jnp.float32)],
        ),
        compiler_params=pltpu.CompilerParams(
            dimension_semantics=("parallel", "parallel", "arbitrary")),
    )(x, w, b)


def _row_tile(hw):
    if hw <= 512:
        return hw
    for t in (512, 256, 128, 64, 32, 16, 8):
        if hw % t == 0:
            return t
    return hw


@jax.jit
def se_scale_add_relu(x, s, r):
    """relu(x * s + r); x,r:(B,H,W,C) bf16, s:(B,C) f32."""
    B, H, W, C = x.shape
    hw = H * W
    xf = x.reshape(B, hw, C)
    rf = r.astype(x.dtype).reshape(B, hw, C)
    sf = s.astype(jnp.float32).reshape(B, 1, C)
    tr = _row_tile(hw)
    out = pl.pallas_call(
        _se_scale_add_relu_kernel,
        out_shape=jax.ShapeDtypeStruct((B, hw, C), x.dtype),
        grid=(B, hw // tr),
        in_specs=[
            pl.BlockSpec((None, tr, C), lambda b, i: (b, i, 0)),
            pl.BlockSpec((None, 1, C), lambda b, i: (b, 0, 0)),
            pl.BlockSpec((None, tr, C), lambda b, i: (b, i, 0)),
        ],
        out_specs=pl.BlockSpec((None, tr, C), lambda b, i: (b, i, 0)),
        compiler_params=pltpu.CompilerParams(
            dimension_semantics=("parallel", "parallel")),
    )(xf, sf, rf)
    return out.reshape(B, H, W, C)


# ---------------------------------------------------------------------------
# Conv glue (padding / tap gather / pooling / resize)
# ---------------------------------------------------------------------------

def _gather_taps(x, k, stride, pad):
    """JAX-level im2col for the few strided kxk convs, channel-minor tap
    layout: out[..., c*k*k + t] = x_pad[:, i*s+di, j*s+dj, c], t = di*k+dj."""
    if pad:
        x = jnp.pad(x, ((0, 0), (pad, pad), (pad, pad), (0, 0)))
    N, Hp, Wp, C = x.shape
    ho = (Hp - k) // stride + 1
    wo = (Wp - k) // stride + 1
    taps = [x[:, di:di + stride * (ho - 1) + 1:stride,
              dj:dj + stride * (wo - 1) + 1:stride, :]
            for di in range(k) for dj in range(k)]
    g = jnp.stack(taps, axis=-1)                      # (N, ho, wo, C, k*k)
    return g.reshape(N, ho, wo, C * k * k)


def conv_apply(x, p, act, *, with_pool=False):
    """NHWC conv with folded-BN bias + fused activation via the Pallas kernel."""
    x = x.astype(jnp.bfloat16)
    kh, kw, stride, pad = p["kh"], p["kw"], p["stride"], p["pad"]
    if p["pre_subsample"]:                 # 1x1 stride-s conv == subsample + 1x1
        x = x[:, ::stride, ::stride, :]
        stride = 1
    if p["tap_gather"]:                    # 3x3 stride-s conv -> "1x1" conv
        x = _gather_taps(x, kh, stride, pad)
        kh = kw = 1
        pad = 0
        stride = 1
    N, H, W, C = x.shape
    if kh == 1:
        ho, wo, wp = H, W, W
        xf = x.reshape(N, H * W, C)
        tap_offsets = (0,)
    else:
        # stride-1 kxk conv: spatial zero-pad (+1 extra bottom row so the
        # flattened per-tap row windows never read out of bounds).
        wp = W + 2 * pad
        ho = H + 2 * pad - (kh - 1)
        wo = W + 2 * pad - (kw - 1)
        xp = jnp.pad(x, ((0, 0), (pad, pad + 1), (pad, pad), (0, 0)))
        xf = xp.reshape(N, (H + 2 * pad + 1) * wp, C)
        tap_offsets = tuple(di * wp + dj for di in range(kh) for dj in range(kw))
    mo = ho * wp
    res = fused_conv(xf, p["w"], p["b"], tap_offsets=tap_offsets, mo=mo,
                     act=act, diag=p["diag"], with_pool=with_pool)
    out = res[0] if with_pool else res
    cnow = out.shape[-1]
    if kh == 1:
        out = out.reshape(N, ho, wo, cnow)
    else:
        # drop the (kw-1) wrap-around garbage columns produced per output row
        out = out.reshape(N, ho, wp, cnow)[:, :, :wo, :]
    if cnow != p["cout"]:
        out = out[..., :p["cout"]]
    if with_pool:
        pooled = res[1][:, 0, :]
        if cnow != p["cout"]:
            pooled = pooled[:, :p["cout"]]
        return out, pooled
    return out


def maxpool_3x3_s2_ceil(x):
    """nn.MaxPool2d(3, stride=2, ceil_mode=True), padding=0."""
    N, H, W, C = x.shape
    Ho = -(-(H - 3) // 2) + 1
    Wo = -(-(W - 3) // 2) + 1
    pad_h = max(0, (Ho - 1) * 2 + 3 - H)
    pad_w = max(0, (Wo - 1) * 2 + 3 - W)
    y = lax.reduce_window(
        x.astype(jnp.float32), -jnp.inf, lax.max,
        window_dimensions=(1, 3, 3, 1), window_strides=(1, 2, 2, 1),
        padding=((0, 0), (0, pad_h), (0, pad_w), (0, 0)))
    return y.astype(x.dtype)


def upsample_bilinear(x, scale):
    """F.interpolate(mode='bilinear', align_corners=False) equivalent."""
    N, H, W, C = x.shape
    y = jax.image.resize(x.astype(jnp.float32),
                         (N, H * scale, W * scale, C), method="bilinear")
    return y.astype(jnp.bfloat16)


# ---------------------------------------------------------------------------
# Deterministic synthetic parameters (prepped for the kernel)
# ---------------------------------------------------------------------------

_BN_EPS = 1e-5


class ParamGen:
    def __init__(self, seed=0):
        self._key = jax.random.PRNGKey(seed)
        self._n = 0

    def _next(self):
        self._n += 1
        return jax.random.fold_in(self._key, self._n)

    def normal(self, shape, scale=1.0):
        return scale * jax.random.normal(self._next(), shape, jnp.float32)

    def uniform(self, shape, lo, hi):
        return jax.random.uniform(self._next(), shape, jnp.float32, lo, hi)


def _fold_bn(pg, w, cout):
    gamma = 1.0 + pg.normal((cout,), 0.1)
    beta = pg.normal((cout,), 0.1)
    mean = pg.normal((cout,), 0.1)
    var = pg.uniform((cout,), 0.5, 1.5)
    scale = gamma / jnp.sqrt(var + _BN_EPS)
    return w * scale, beta - mean * scale


def _diag_extract(w_full, wci, tn):
    """Extract the block-diagonal (grouped) weight blocks: (T, K, Cout) ->
    (T, wci, Cout) where column tile i keeps input rows [i*wci, (i+1)*wci)."""
    T, K, cout = w_full.shape
    nb = cout // tn
    assert K == nb * wci
    wf = w_full.reshape(T, nb, wci, cout)
    return jnp.concatenate(
        [wf[:, i, :, i * tn:(i + 1) * tn] for i in range(nb)], axis=-1)


def _prep_dense(w, b, *, stride, pad, cout_pad=None):
    kh, kw, cin, cout = w.shape
    p = {"kh": kh, "kw": kw, "stride": stride, "pad": pad, "cout": cout,
         "diag": False, "tap_gather": False, "pre_subsample": False}
    if cout_pad is not None and cout_pad > cout:
        w = jnp.pad(w, ((0, 0), (0, 0), (0, 0), (0, cout_pad - cout)))
        b = jnp.pad(b, (0, cout_pad - cout))
    wt = w.reshape(kh * kw, cin, w.shape[-1])
    if kh > 1 and stride > 1:
        # stride-2 3x3 -> JAX-side tap gather ("1x1" conv); channel-minor taps.
        wt = wt.transpose(1, 0, 2).reshape(1, cin * kh * kw, w.shape[-1])
        p["tap_gather"] = True
    elif kh == 1 and stride > 1:
        p["pre_subsample"] = True
    p["w"] = wt.astype(jnp.bfloat16)
    p["b"] = b.reshape(1, -1).astype(jnp.float32)
    return p


def _prep_grouped(w, b, *, stride, pad, tn=128):
    kh, kw, cin, cout = w.shape          # dense block-diagonal (== grouped)
    p = {"kh": kh, "kw": kw, "stride": stride, "pad": pad, "cout": cout,
         "diag": True, "tap_gather": False, "pre_subsample": False}
    wt = w.reshape(kh * kw, cin, cout)
    if stride > 1:
        wt = wt.transpose(1, 0, 2).reshape(1, cin * kh * kw, cout)
        p["tap_gather"] = True
        wci = tn * kh * kw
    else:
        wci = tn
    p["w"] = _diag_extract(wt, wci, tn).astype(jnp.bfloat16)
    p["b"] = b.reshape(1, -1).astype(jnp.float32)
    return p


def make_conv_bn(pg, cin, cout, k, *, groups=1, stride=1, pad=0):
    """Conv2d(bias=False) + BatchNorm2d (eval), BN folded, kernel-prepped."""
    fan_in = (cin // groups) * k * k
    w = pg.normal((k, k, cin, cout), 1.0 / math.sqrt(fan_in))
    if groups > 1:
        cgi, cgo = cin // groups, cout // groups
        mask = (jnp.arange(cin)[:, None] // cgi) == (jnp.arange(cout)[None, :] // cgo)
        w = w * mask.astype(jnp.float32)      # block-diagonal == grouped conv
    w, b = _fold_bn(pg, w, cout)
    if groups > 1:
        return _prep_grouped(w, b, stride=stride, pad=pad)
    return _prep_dense(w, b, stride=stride, pad=pad)


def make_conv_bias(pg, cin, cout, k, *, pad=0, cout_pad=None):
    fan_in = cin * k * k
    w = pg.normal((k, k, cin, cout), 1.0 / math.sqrt(fan_in))
    b = pg.normal((cout,), 0.01)
    return _prep_dense(w, b, stride=1, pad=pad, cout_pad=cout_pad)


def make_linear(pg, cin, cout):
    w = pg.normal((cin, cout), 1.0 / math.sqrt(cin))
    b = pg.normal((cout,), 0.01)
    return w, b


def make_bottleneck(pg, inplanes, planes, *, groups=32, reduction=16,
                    stride=1, downsample=False, base_width=4):
    """SEResNeXtBottleneck from pretrainedmodels.senet (assumed source)."""
    width = int(math.floor(planes * (base_width / 64)) * groups)
    p = {
        "conv1": make_conv_bn(pg, inplanes, width, 1),
        "conv2": make_conv_bn(pg, width, width, 3, groups=groups,
                              stride=stride, pad=1),
        "conv3": make_conv_bn(pg, width, planes * 4, 1),
        "se_fc1": make_linear(pg, planes * 4, (planes * 4) // reduction),
        "se_fc2": make_linear(pg, (planes * 4) // reduction, planes * 4),
    }
    if downsample:
        p["down"] = make_conv_bn(pg, inplanes, planes * 4, 1, stride=stride)
    return p


def make_layer(pg, inplanes, planes, blocks, stride):
    params = [make_bottleneck(pg, inplanes, planes, stride=stride, downsample=True)]
    for _ in range(blocks - 1):
        params.append(make_bottleneck(pg, planes * 4, planes))
    return params


def make_decoder(pg, cin, ch, cout):
    return {"conv1": make_conv_bn(pg, cin, ch, 3, pad=1),
            "conv2": make_conv_bn(pg, ch, cout, 3, pad=1)}


def make_params(pg, out_channel=1):
    EX = 4
    return {
        "stem": {  # custom layer0 with Mish activations
            "conv1": make_conv_bn(pg, 3, 64, 3, stride=2, pad=1),
            "conv2": make_conv_bn(pg, 64, 64, 3, pad=1),
            "conv3": make_conv_bn(pg, 64, 64, 3, pad=1),
        },
        "layer1": make_layer(pg, 64, 64, 3, 1),      # -> 256 ch
        "layer2": make_layer(pg, 256, 128, 4, 2),    # -> 512 ch
        "layer3": make_layer(pg, 512, 256, 6, 2),    # -> 1024 ch
        "layer4": make_layer(pg, 1024, 512, 3, 2),   # -> 2048 ch
        "center": {
            "conv1": make_conv_bn(pg, 512 * EX, 512, 3, pad=1),
            "conv2": make_conv_bn(pg, 512, 256, 3, pad=1),
        },
        "decoder5": make_decoder(pg, 512 * EX + 256, 512, 64),
        "decoder4": make_decoder(pg, 256 * EX + 64, 256, 64),
        "decoder3": make_decoder(pg, 128 * EX + 64, 128, 64),
        "decoder2": make_decoder(pg, 64 * EX + 64, 64, 64),
        "logit": {
            "conv1": make_conv_bn(pg, 256, 64, 3, pad=1),
            "conv2": make_conv_bias(pg, 64, out_channel, 1, cout_pad=128),
        },
        "last_linear": make_linear(pg, 512 * EX, out_channel),
    }


# ---------------------------------------------------------------------------
# Forward pass
# ---------------------------------------------------------------------------

def bottleneck_forward(x, p):
    residual = x
    out = conv_apply(x, p["conv1"], "relu")
    out = conv_apply(out, p["conv2"], "relu")
    # conv3 with the SE global-average-pool fused into the same kernel.
    out, s = conv_apply(out, p["conv3"], "none", with_pool=True)
    if "down" in p:
        residual = conv_apply(x, p["down"], "none")
    # SE excitation: tiny FCs stay in plain XLA (jnp.dot); routing them through
    # a padded Pallas matmul costs more in launch/pad overhead than the work.
    w1, b1 = p["se_fc1"]
    w2, b2 = p["se_fc2"]
    s = jax.nn.relu(jnp.dot(s, w1) + b1)
    s = jax.nn.sigmoid(jnp.dot(s, w2) + b2)
    return se_scale_add_relu(out, s, residual)


def decoder_forward(x, p):
    # TODO(synk): Decoder source not in the snippet; standard implementation
    # assumed (2x bilinear upsample + two ConvBn+ReLU 3x3, no attention).
    x = upsample_bilinear(x, 2)
    x = conv_apply(x, p["conv1"], "relu")
    x = conv_apply(x, p["conv2"], "relu")
    return x


def se_resnext_unet_plus_forward(params, x_nchw):
    # layout: input NCHW (PyTorch) -> NHWC bf16 for compute -> output NCHW f32.
    x = jnp.transpose(x_nchw, (0, 2, 3, 1))

    st = params["stem"]
    x = conv_apply(x, st["conv1"], "mish")
    x = conv_apply(x, st["conv2"], "mish")
    x = conv_apply(x, st["conv3"], "mish")
    x = maxpool_3x3_s2_ceil(x)

    e2 = x
    for p in params["layer1"]:
        e2 = bottleneck_forward(e2, p)
    e3 = e2
    for p in params["layer2"]:
        e3 = bottleneck_forward(e3, p)
    e4 = e3
    for p in params["layer3"]:
        e4 = bottleneck_forward(e4, p)
    e5 = e4
    for p in params["layer4"]:
        e5 = bottleneck_forward(e5, p)

    c = params["center"]
    f = conv_apply(e5, c["conv1"], "relu")
    f = conv_apply(f, c["conv2"], "relu")

    # TODO(synk): the decoder skip-concats could be kept unmaterialised by
    # feeding both tensors to the conv kernel with two K sub-ranges.
    d5 = decoder_forward(jnp.concatenate([f, e5], axis=-1), params["decoder5"])
    d4 = decoder_forward(jnp.concatenate([d5, e4], axis=-1), params["decoder4"])
    d3 = decoder_forward(jnp.concatenate([d4, e3], axis=-1), params["decoder3"])
    d2 = decoder_forward(jnp.concatenate([d3, e2], axis=-1), params["decoder2"])

    f = jnp.concatenate(
        [d2,
         upsample_bilinear(d3, 2),
         upsample_bilinear(d4, 4),
         upsample_bilinear(d5, 8)], axis=-1)

    lg = params["logit"]
    f = conv_apply(f, lg["conv1"], "relu")
    logit_pixel = conv_apply(f, lg["conv2"], "none")

    # classification head: AdaptiveAvgPool2d(1) -> Dropout(0.5) -> Linear
    # TODO(synk): nn.Dropout is identity at inference; implemented as such.
    pooled = jnp.mean(e5.astype(jnp.float32), axis=(1, 2))          # (B, 2048)
    w, b = params["last_linear"]
    logit_image = jnp.dot(pooled, w) + b

    logit_pixel = jnp.transpose(logit_pixel, (0, 3, 1, 2)).astype(jnp.float32)
    return logit_pixel, logit_image


# ---------------------------------------------------------------------------
# Main
# ---------------------------------------------------------------------------

if __name__ == "__main__":
    key = jax.random.PRNGKey(0)
    # Small input consistent with the module (3-channel image, NCHW).
    x = jax.random.normal(key, (2, 3, 32, 32), jnp.float32)

    pg = ParamGen(seed=0)
    params = make_params(pg, out_channel=1)

    logit_pixel, logit_image = se_resnext_unet_plus_forward(params, x)
    jax.block_until_ready((logit_pixel, logit_image))

    assert logit_pixel.shape == (2, 1, 16, 16), logit_pixel.shape
    assert logit_image.shape == (2, 1), logit_image.shape
    assert bool(jnp.all(jnp.isfinite(logit_pixel)))
    assert bool(jnp.all(jnp.isfinite(logit_image)))
    print("KERNEL_OK")
</pallas_src>

<mosaic_0001>
module attributes {stable_mosaic.version = 11 : i64} {
  func.func @_conv_mm_kernel(%arg0: i32, %arg1: i32, %arg2: i32, %arg3: memref<1x256x27xbf16, #tpu.memory_space<vmem>>, %arg4: memref<1x27x64xbf16, #tpu.memory_space<vmem>>, %arg5: memref<1x64xf32, #tpu.memory_space<vmem>>, %arg6: memref<1x256x64xbf16, #tpu.memory_space<vmem>>, %arg7: memref<256x64xf32, #tpu.memory_space<vmem>>) attributes {dimension_semantics = [#tpu.dimension_semantics<parallel>, #tpu.dimension_semantics<parallel>, #tpu.dimension_semantics<arbitrary>], iteration_bounds = array<i64: 2, 1, 1>, scalar_prefetch = 0 : i64, scratch_operands = 1 : i64, tpu.core_type = #tpu.core_type<tc>, window_params = [{transform_indices = @transform_0, window_bounds = array<i64: 1, 256, 27>}, {transform_indices = @transform_1, window_bounds = array<i64: 1, 27, 64>}, {transform_indices = @transform_2, window_bounds = array<i64: 1, 64>}, {transform_indices = @transform_3, window_bounds = array<i64: 1, 256, 64>}]} {
    %c0_i32 = arith.constant 0 : i32
    %0 = arith.cmpi eq, %arg2, %c0_i32 : i32
    %1 = arith.extui %0 : i1 to i32
    %c0_i32_0 = arith.constant 0 : i32
    %2 = arith.cmpi ne, %1, %c0_i32_0 : i32
    scf.if %2 {
      %cst_12 = arith.constant 0.000000e+00 : f32
      %14 = vector.broadcast %cst_12 : f32 to vector<256x64xf32>
      %c0_13 = arith.constant 0 : index
      %c0_14 = arith.constant 0 : index
      %15 = vector.load %arg7[%c0_13, %c0_14] : memref<256x64xf32, #tpu.memory_space<vmem>>, vector<256x64xf32>
      tpu.vector_store %arg7[%c0_13, %c0_14], %14 {strides = array<i32>} : memref<256x64xf32, #tpu.memory_space<vmem>>, vector<256x64xf32>,
    } else {
    }
    %c0 = arith.constant 0 : index
    %c0_1 = arith.constant 0 : index
    %3 = vector.load %arg7[%c0, %c0_1] : memref<256x64xf32, #tpu.memory_space<vmem>>, vector<256x64xf32>
    %c0_2 = arith.constant 0 : index
    %c0_3 = arith.constant 0 : index
    %c0_4 = arith.constant 0 : index
    %4 = vector.load %arg3[%c0_2, %c0_3, %c0_4] : memref<1x256x27xbf16, #tpu.memory_space<vmem>>, vector<1x256x27xbf16>
    %5 = vector.shape_cast %4 : vector<1x256x27xbf16> to vector<256x27xbf16>
    %c0_5 = arith.constant 0 : index
    %c0_6 = arith.constant 0 : index
    %c0_7 = arith.constant 0 : index
    %6 = vector.load %arg4[%c0_5, %c0_6, %c0_7] : memref<1x27x64xbf16, #tpu.memory_space<vmem>>, vector<1x27x64xbf16>
    %7 = vector.shape_cast %6 : vector<1x27x64xbf16> to vector<27x64xbf16>
    %cst = arith.constant dense<0.000000e+00> : vector<256x64xf32>
    %8 = tpu.matmul %5, %7, %cst {dimension_numbers = #tpu.dot_dimension_numbers<[1], [0], [0], [1], [0, 0, 1, 1], [], []>} : vector<256x27xbf16>, vector<27x64xbf16>, vector<256x64xf32> -> vector<256x64xf32>
    %9 = arith.addf %3, %8 : vector<256x64xf32>
    %c0_8 = arith.constant 0 : index
    %c0_9 = arith.constant 0 : index
    %10 = vector.load %arg7[%c0_8, %c0_9] : memref<256x64xf32, #tpu.memory_space<vmem>>, vector<256x64xf32>
    tpu.vector_store %arg7[%c0_8, %c0_9], %9 {strides = array<i32>} : memref<256x64xf32, #tpu.memory_space<vmem>>, vector<256x64xf32>,
    %c0_i32_10 = arith.constant 0 : i32
    %11 = arith.cmpi eq, %arg2, %c0_i32_10 : i32
    %12 = arith.extui %11 : i1 to i32
    %c0_i32_11 = arith.constant 0 : i32
    %13 = arith.cmpi ne, %12, %c0_i32_11 : i32
    scf.if %13 {
      %c0_12 = arith.constant 0 : index
      %c0_13 = arith.constant 0 : index
      %14 = vector.load %arg7[%c0_12, %c0_13] : memref<256x64xf32, #tpu.memory_space<vmem>>, vector<256x64xf32>
      %c0_14 = arith.constant 0 : index
      %c0_15 = arith.constant 0 : index
      %15 = vector.load %arg5[%c0_14, %c0_15] : memref<1x64xf32, #tpu.memory_space<vmem>>, vector<1x64xf32>
      %16 = vector.broadcast %15 : vector<1x64xf32> to vector<256x64xf32>
      %17 = arith.addf %14, %16 : vector<256x64xf32>
      %cst_16 = arith.constant 2.000000e+01 : f32
      %18 = vector.broadcast %cst_16 : f32 to vector<256x64xf32>
      %19 = arith.cmpf ogt, %17, %18 : vector<256x64xf32>
      %cst_17 = arith.constant 2.000000e+01 : f32
      %20 = vector.broadcast %cst_17 : f32 to vector<256x64xf32>
      %21 = arith.minimumf %17, %20 : vector<256x64xf32>
      %22 = math.exp %21 : vector<256x64xf32>
      %23 = math.log1p %22 : vector<256x64xf32>
      %24 = arith.select %19, %17, %23 : vector<256x64xi1>, vector<256x64xf32>
      %25 = math.tanh %24 : vector<256x64xf32>
      %26 = arith.mulf %17, %25 : vector<256x64xf32>
      %27 = arith.truncf %26 : vector<256x64xf32> to vector<256x64xbf16>
      %c0_18 = arith.constant 0 : index
      %c0_19 = arith.constant 0 : index
      %c0_20 = arith.constant 0 : index
      %28 = vector.load %arg6[%c0_18, %c0_19, %c0_20] : memref<1x256x64xbf16, #tpu.memory_space<vmem>>, vector<1x256x64xbf16>
      %29 = vector.shape_cast %28 : vector<1x256x64xbf16> to vector<256x64xbf16>
      %30 = vector.shape_cast %27 : vector<256x64xbf16> to vector<1x256x64xbf16>
      tpu.vector_store %arg6[%c0_18, %c0_19, %c0_20], %30 {strides = array<i32>} : memref<1x256x64xbf16, #tpu.memory_space<vmem>>, vector<1x256x64xbf16>,
    } else {
    }
    return
  }
  func.func @transform_0(%arg0: i32, %arg1: i32, %arg2: i32) -> (i32, i32, i32) {
    %c0_i32 = arith.constant 0 : i32
    %c0_i32_0 = arith.constant 0 : i32
    return %arg0, %c0_i32, %arg2 : i32, i32, i32
  }
  func.func @transform_1(%arg0: i32, %arg1: i32, %arg2: i32) -> (i32, i32, i32) {
    %c0_i32 = arith.constant 0 : i32
    %c0_i32_0 = arith.constant 0 : i32
    return %c0_i32, %arg2, %arg1 : i32, i32, i32
  }
  func.func @transform_2(%arg0: i32, %arg1: i32, %arg2: i32) -> (i32, i32) {
    %c0_i32 = arith.constant 0 : i32
    %c0_i32_0 = arith.constant 0 : i32
    return %c0_i32, %arg1 : i32, i32
  }
  func.func @transform_3(%arg0: i32, %arg1: i32, %arg2: i32) -> (i32, i32, i32) {
    %c0_i32 = arith.constant 0 : i32
    %c0_i32_0 = arith.constant 0 : i32
    return %arg0, %c0_i32, %arg1 : i32, i32, i32
  }
}

</mosaic_0001>

<bundles_post_ra>
// kernel: fused_conv.1
= control target key start
LH: loop header
LB: loop body
LE: loop exit
PB: predicated region body
PF: predicated region fallthrough
CT: control target
= control target key end

     0   :  { %s2054_s12 = smov 0   ;;  %s2056_s13 = smov 0   ;;  %s2840_s0 = inlined_call_operand.vmem [shape: bf16[2,256,27], index: 0, kind: input, shape index: {}]   ;;  %s2841_s1 = inlined_call_operand.vmem [shape: bf16[1,27,64], index: 1, kind: input, shape index: {}]   ;;  %s2842_s2 = inlined_call_operand.vmem [shape: f32[1,64], index: 2, kind: input, shape index: {}]   ;;  %s2843_s3 = inlined_call_operand.vmem [shape: bf16[2,256,64], index: 3, kind: output, shape index: {}]  }
   0x1   :  { %s2058_s14 = smov 0  }
   0x2 LB: > { %s32_s15 = sadd.s32 1, %s2026_s13  ;;  %p1605_p0 = scmp.ge.s32.totalorder %s2030_s14, 1  ;;  %s2030_s14 = sphi %s2058_s14, %s13_s14   ;;  %s2026_s13 = sphi %s2056_s13, %s2887_s13   ;;  %s2022_s12 = sphi %s2054_s12, %s2886_s12  }
   0x3   : > { %p34_p1 = scmp.ge.s32.totalorder %s32_s15, 2  ;;  %p187_p2 = scmp.lt.s32.totalorder %s2030_s14, 3 }
   0x5   : > { %s2889_s15 = smov (%p34_p1, %s32_s15), 0  ;;  %p188_p3 = pnand %p1605_p0, %p187_p2 }
   0x6   : > { %p228_p4 = scmp.lt.s32.totalorder (!%p188_p3), %s2022_s12, 1 }
   0x7   : > { %191 = sbr.rel (%p188_p3) target bundleno = 421 (0x1a5), region = 32 }
   0xc   : > { %v1797_v0 = vld [vmem:[%s2841_s1 + $0x8] sm:$0x3f]   ;;  %vm502_vm0 = vcmask 1044480   ;;  %vm503_vm1 = vcmask 1045504   ;;  %v2032_v1 = vmov 65535   ;;  %vm261_vm2 = vcmask 523264  }
   0xd   : > { %v504_v2 = vsel %vm502_vm0, 4294967295, %v2032_v1  ;;  %v1798_v5 = vld [vmem:[%s2841_s1] sm:$0xff]   ;;  %s2891_s12 = smov (!%p228_p4, %s2022_s12), 1  ;;  %v2033_v6 = vmov 0.0   ;;  %vm453_vm3 = vcmask 220160  }
   0xe   : > { %v505_v3 = vsel %vm503_vm1, %v504_v2, 0  ;;  %264 = vst.msk [vmem:[#allocation2 + $0x10] sm:$0xff] %vm261_vm2, %v2033_v6  ;;  %262 = vst.msk [vmem:[#allocation2] sm:$0xff] %vm261_vm2, %v2033_v6  ;;  %s1679_s20 = sshll.u32 %s2891_s12, 7  ;;  %v2161_v49 = vld [vmem:[%s2842_s2] ss:$0 sm:$0xff] }
   0xf   : > { %v507_v4 = vand.u32 %v1797_v0, %v505_v3  ;;  %263 = vst.msk [vmem:[#allocation2 + $0x8] sm:$0xff] %vm261_vm2, %v2033_v6  ;;  %265 = vst.msk [vmem:[#allocation2 + $0x18] sm:$0xff] %vm261_vm2, %v2033_v6  ;;  %s2118_s23 = scalar_lea.vmem %s2840_s0, %s1679_s20  ;;  %s2435_s28 = scalar_lea.vmem %s2843_s3, %s1679_s20 }
  0x10   : > { %266 = vst.msk [vmem:[#allocation2 + $0x20] sm:$0xff] %vm261_vm2, %v2033_v6  ;;  %267 = vst.msk [vmem:[#allocation2 + $0x28] sm:$0xff] %vm261_vm2, %v2033_v6  ;;  %v1799_v7 = vld [vmem:[%s2118_s23] sm:$0xff]   ;;  %v1801_v9 = vld [vmem:[%s2118_s23 + $0x8] sm:$0xff]  }
  0x11   : > { %268 = vst.msk [vmem:[#allocation2 + $0x30] sm:$0xff] %vm261_vm2, %v2033_v6  ;;  %269 = vst.msk [vmem:[#allocation2 + $0x38] sm:$0xff] %vm261_vm2, %v2033_v6  ;;  %1731 = vmatprep.subr.bf16.mxu0 %v507_v4  ;;  %1767 = vmatprep.subr.bf16.mxu1 %v507_v4  ;;  %v1800_v8 = vld [vmem:[%s2118_s23 + $0x40] sm:$0xff]   ;;  %v1802_v10 = vld [vmem:[%s2118_s23 + $0x48] sm:$0xff]  }
  0x12   : > { %270 = vst.msk [vmem:[#allocation2 + $0x40] sm:$0xff] %vm261_vm2, %v2033_v6  ;;  %271 = vst.msk [vmem:[#allocation2 + $0x48] sm:$0xff] %vm261_vm2, %v2033_v6  ;;  %1732 = vmatpush3.bf16.msra.mxu0 %v507_v4  ;;  %1769 = vmatpush3.bf16.msra.mxu1 %v507_v4  ;;  %v1803_v11 = vld [vmem:[%s2118_s23 + $0x10] sm:$0xff]   ;;  %v1805_v13 = vld [vmem:[%s2118_s23 + $0x18] sm:$0xff]  }
  0x13   : > { %272 = vst.msk [vmem:[#allocation2 + $0x50] sm:$0xff] %vm261_vm2, %v2033_v6  ;;  %273 = vst.msk [vmem:[#allocation2 + $0x58] sm:$0xff] %vm261_vm2, %v2033_v6  ;;  %1733 = vmatprep.subr.bf16.mxu0 %v1798_v5  ;;  %1768 = vmatprep.subr.bf16.mxu1 %v1798_v5  ;;  %v1804_v12 = vld [vmem:[%s2118_s23 + $0x50] sm:$0xff]   ;;  %v1806_v14 = vld [vmem:[%s2118_s23 + $0x58] sm:$0xff]  }
  0x14   : > { %274 = vst.msk [vmem:[#allocation2 + $0x60] sm:$0xff] %vm261_vm2, %v2033_v6  ;;  %275 = vst.msk [vmem:[#allocation2 + $0x68] sm:$0xff] %vm261_vm2, %v2033_v6  ;;  %1735 = vmatprep.mubr.msk.bf16.mxu0 %vm453_vm3, %v1799_v7  ;;  %1751 = vmatprep.mubr.msk.bf16.mxu1 %vm453_vm3, %v1800_v8  ;;  %v1807_v15 = vld [vmem:[%s2118_s23 + $0x20] sm:$0xff]   ;;  %v1809_v17 = vld [vmem:[%s2118_s23 + $0x28] sm:$0xff]  }
  0x15   : > { %276 = vst.msk [vmem:[#allocation2 + $0x70] sm:$0xff] %vm261_vm2, %v2033_v6  ;;  %277 = vst.msk [vmem:[#allocation2 + $0x78] sm:$0xff] %vm261_vm2, %v2033_v6  ;;  %v1808_v16 = vld [vmem:[%s2118_s23 + $0x60] sm:$0xff]   ;;  %v1810_v18 = vld [vmem:[%s2118_s23 + $0x68] sm:$0xff]  }
  0x16   : > { %278 = vst.msk [vmem:[#allocation2 + $0x80] sm:$0xff] %vm261_vm2, %v2033_v6  ;;  %279 = vst.msk [vmem:[#allocation2 + $0x88] sm:$0xff] %vm261_vm2, %v2033_v6  ;;  %1734 = vmatpush3.bf16.msra.mxu0 %v1798_v5  ;;  %1770 = vmatpush3.bf16.msra.mxu1 %v1798_v5  ;;  %v1811_v19 = vld [vmem:[%s2118_s23 + $0x30] sm:$0xff]   ;;  %v1813_v21 = vld [vmem:[%s2118_s23 + $0x38] sm:$0xff]  }
  0x17   : > { %280 = vst.msk [vmem:[#allocation2 + $0x90] sm:$0xff] %vm261_vm2, %v2033_v6  ;;  %281 = vst.msk [vmem:[#allocation2 + $0x98] sm:$0xff] %vm261_vm2, %v2033_v6  ;;  %v1812_v20 = vld [vmem:[%s2118_s23 + $0x70] sm:$0xff]   ;;  %v1814_v22 = vld [vmem:[%s2118_s23 + $0x78] sm:$0xff]  }
  0x18   : > { %282 = vst.msk [vmem:[#allocation2 + $0xa0] sm:$0xff] %vm261_vm2, %v2033_v6  ;;  %283 = vst.msk [vmem:[#allocation2 + $0xa8] sm:$0xff] %vm261_vm2, %v2033_v6  ;;  %v296_v23 = vld [vmem:[#allocation2 + $0x10] sm:$0xff]  ;;  %v294_v27 = vld [vmem:[#allocation2] sm:$0xff] }
  0x19   : > { %284 = vst.msk [vmem:[#allocation2 + $0xb0] sm:$0xff] %vm261_vm2, %v2033_v6  ;;  %285 = vst.msk [vmem:[#allocation2 + $0xb8] sm:$0xff] %vm261_vm2, %v2033_v6  ;;  %1736 = vmatmul.mubr.msk.bf16.vlgmr.msra.gmra.mxu0 %vm453_vm3, %v1801_v9  ;;  %1752 = vmatmul.mubr.msk.bf16.vlgmr.msra.gmra.mxu1 %vm453_vm3, %v1802_v10  ;;  %v297_v33 = vld [vmem:[#allocation2 + $0x18] sm:$0xff]  ;;  %v295_v39 = vld [vmem:[#allocation2 + $0x8] sm:$0xff] }
  0x1a   : > { %286 = vst.msk [vmem:[#allocation2 + $0xc0] sm:$0xff] %vm261_vm2, %v2033_v6  ;;  %287 = vst.msk [vmem:[#allocation2 + $0xc8] sm:$0xff] %vm261_vm2, %v2033_v6  ;;  %1739 = vmatprep.mubr.msk.bf16.mxu0 %vm453_vm3, %v1803_v11  ;;  %1755 = vmatprep.mubr.msk.bf16.mxu1 %vm453_vm3, %v1804_v12  ;;  %v300_v45 = vld [vmem:[#allocation2 + $0x30] sm:$0xff]  ;;  %v298_v52 = vld [vmem:[#allocation2 + $0x20] sm:$0xff] }
  0x1b   : > { %288 = vst.msk [vmem:[#allocation2 + $0xd0] sm:$0xff] %vm261_vm2, %v2033_v6  ;;  %289 = vst.msk [vmem:[#allocation2 + $0xd8] sm:$0xff] %vm261_vm2, %v2033_v6  ;;  %v301_v0 = vld [vmem:[#allocation2 + $0x38] sm:$0xff] }
  0x1c   : > { %290 = vst.msk [vmem:[#allocation2 + $0xe0] sm:$0xff] %vm261_vm2, %v2033_v6  ;;  %291 = vst.msk [vmem:[#allocation2 + $0xe8] sm:$0xff] %vm261_vm2, %v2033_v6 }
  0x1d   : > { %292 = vst.msk [vmem:[#allocation2 + $0xf0] sm:$0xff] %vm261_vm2, %v2033_v6  ;;  %293 = vst.msk [vmem:[#allocation2 + $0xf8] sm:$0xff] %vm261_vm2, %v2033_v6  ;;  %v310_v28 = vld [vmem:[#allocation2 + $0x80] sm:$0xff]  ;;  %v311_v40 = vld [vmem:[#allocation2 + $0x88] sm:$0xff] }
  0x1e   : > { %v312_v24 = vld [vmem:[#allocation2 + $0x90] sm:$0xff]  ;;  %v313_v34 = vld [vmem:[#allocation2 + $0x98] sm:$0xff] }
  0x1f   : > { %v314_v53 = vld [vmem:[#allocation2 + $0xa0] sm:$0xff] }
  0x20   : > { %v316_v46 = vld [vmem:[#allocation2 + $0xb0] sm:$0xff]  ;;  %v317_v1 = vld [vmem:[#allocation2 + $0xb8] sm:$0xff] }
  0x21   : > { %1740 = vmatmul.mubr.msk.bf16.gmra.mxu0 %vm453_vm3, %v1805_v13  ;;  %1756 = vmatmul.mubr.msk.bf16.gmra.mxu1 %vm453_vm3, %v1806_v14 }
  0x22   : > { %1743 = vmatprep.mubr.msk.bf16.mxu0 %vm453_vm3, %v1807_v15  ;;  %1759 = vmatprep.mubr.msk.bf16.mxu1 %vm453_vm3, %v1808_v16 }
  0x29   : > { %1744 = vmatmul.mubr.msk.bf16.gmra.mxu0 %vm453_vm3, %v1809_v17  ;;  %1760 = vmatmul.mubr.msk.bf16.gmra.mxu1 %vm453_vm3, %v1810_v18 }
  0x2a   : > { %1747 = vmatprep.mubr.msk.bf16.mxu0 %vm453_vm3, %v1811_v19  ;;  %1763 = vmatprep.mubr.msk.bf16.mxu1 %vm453_vm3, %v1812_v20 }
  0x31   : > { %1748 = vmatmul.mubr.msk.bf16.gmra.mxu0 %vm453_vm3, %v1813_v21  ;;  %1764 = vmatmul.mubr.msk.bf16.gmra.mxu1 %vm453_vm3, %v1814_v22 }
  0xd9   : > { %v1737_v25 = vpop.f32.mrf.mxu0  ;;  %v1753_v26 = vpop.f32.mrf.mxu1 }
  0xda   : > { %v672_v29 = vadd.f32 %v1737_v25, %v296_v23  ;;  %v688_v30 = vadd.f32 %v1753_v26, %v312_v24  ;;  %v299_v23 = vld [vmem:[#allocation2 + $0x28] sm:$0xff] }
  0xdb   : > { %v543_v31 = vpop.f32.mrf.mxu0  ;;  %v607_v32 = vpop.f32.mrf.mxu1 }
  0xdc   : > { %705 = vst.msk [vmem:[#allocation2 + $0x10] sm:$0xff] %vm261_vm2, %v672_v29  ;;  %721 = vst.msk [vmem:[#allocation2 + $0x90] sm:$0xff] %vm261_vm2, %v688_v30  ;;  %v670_v35 = vadd.f32 %v543_v31, %v294_v27  ;;  %v686_v36 = vadd.f32 %v607_v32, %v310_v28 }
  0xdd   : > { %v1738_v37 = vpop.f32.mrf.mxu0  ;;  %v1754_v38 = vpop.f32.mrf.mxu1 }
  0xde   : > { %703 = vst.msk [vmem:[#allocation2] sm:$0xff] %vm261_vm2, %v670_v35  ;;  %719 = vst.msk [vmem:[#allocation2 + $0x80] sm:$0xff] %vm261_vm2, %v686_v36  ;;  %v673_v41 = vadd.f32 %v1738_v37, %v297_v33  ;;  %v689_v42 = vadd.f32 %v1754_v38, %v313_v34 }
  0xdf   : > { %v546_v43 = vpop.f32.mrf.mxu0  ;;  %v610_v44 = vpop.f32.mrf.mxu1 }
  0xe0   : > { %706 = vst.msk [vmem:[#allocation2 + $0x18] sm:$0xff] %vm261_vm2, %v673_v41  ;;  %722 = vst.msk [vmem:[#allocation2 + $0x98] sm:$0xff] %vm261_vm2, %v689_v42  ;;  %v671_v47 = vadd.f32 %v546_v43, %v295_v39  ;;  %v687_v48 = vadd.f32 %v610_v44, %v311_v40 }
  0xe1   : > { %v1741_v50 = vpop.f32.mrf.mxu0  ;;  %v1757_v51 = vpop.f32.mrf.mxu1 }
  0xe2   : > { %704 = vst.msk [vmem:[#allocation2 + $0x8] sm:$0xff] %vm261_vm2, %v671_v47  ;;  %720 = vst.msk [vmem:[#allocation2 + $0x88] sm:$0xff] %vm261_vm2, %v687_v48  ;;  %v676_v54 = vadd.f32 %v1741_v50, %v300_v45  ;;  %v692_v55 = vadd.f32 %v1757_v51, %v316_v46 }
  0xe3   : > { %v740_v56 = vld [vmem:[#allocation2 + $0x10] sm:$0xff]  ;;  %v559_v58 = vpop.f32.mrf.mxu0  ;;  %v623_v59 = vpop.f32.mrf.mxu1 }
  0xe4   : > { %v756_v57 = vld [vmem:[#allocation2 + $0x90] sm:$0xff]  ;;  %v2166_v60 = vadd.f32 %v2161_v49, %v740_v56  ;;  %709 = vst.msk [vmem:[#allocation2 + $0x30] sm:$0xff] %vm261_vm2, %v676_v54  ;;  %725 = vst.msk [vmem:[#allocation2 + $0xb0] sm:$0xff] %vm261_vm2, %v692_v55  ;;  %v674_v62 = vadd.f32 %v559_v58, %v298_v52  ;;  %v690_v63 = vadd.f32 %v623_v59, %v314_v53  ;;  %v315_v55 = vld [vmem:[#allocation2 + $0xa8] sm:$0xff] }
  0xe5   : > { %v2169_v61 = vadd.f32 %v2161_v49, %v756_v57  ;;  %v738_v2 = vld [vmem:[#allocation2] sm:$0xff]  ;;  %v1742_v4 = vpop.f32.mrf.mxu0  ;;  %v1758_v5 = vpop.f32.mrf.mxu1  ;;  %v304_v56 = vld [vmem:[#allocation2 + $0x50] sm:$0xff] }
  0xe6   : > { %v754_v3 = vld [vmem:[#allocation2 + $0x80] sm:$0xff]  ;;  %v843_v6 = vmin.f32 %v2166_v60, 20.0  ;;  %707 = vst.msk [vmem:[#allocation2 + $0x20] sm:$0xff] %vm261_vm2, %v674_v62  ;;  %723 = vst.msk [vmem:[#allocation2 + $0xa0] sm:$0xff] %vm261_vm2, %v690_v63  ;;  %v2178_v8 = vadd.f32 %v2161_v49, %v738_v2  ;;  %v677_v12 = vadd.f32 %v1742_v4, %v301_v0  ;;  %v693_v13 = vadd.f32 %v1758_v5, %v317_v1  ;;  %v320_v62 = vld [vmem:[#allocation2 + $0xd0] sm:$0xff] }
  0xe7   : > { %v859_v7 = vmin.f32 %v2169_v61, 20.0  ;;  %v2181_v9 = vadd.f32 %v2161_v49, %v754_v3  ;;  %v741_v10 = vld [vmem:[#allocation2 + $0x18] sm:$0xff]  ;;  %v562_v24 = vpop.f32.mrf.mxu0  ;;  %v626_v45 = vpop.f32.mrf.mxu1  ;;  %vm811_vm5 = vcmp.gt.f32.partialorder %v2166_v60, 20.0  ;;  %vm827_vm7 = vcmp.gt.f32.partialorder %v2169_v61, 20.0 }
  0xe8   : > { %v757_v11 = vld [vmem:[#allocation2 + $0x98] sm:$0xff]  ;;  %v877_v14 = vmul.f32 1.442695, %v843_v6  ;;  %v2184_v16 = vadd.f32 %v2161_v49, %v741_v10  ;;  %v841_v18 = vmin.f32 %v2178_v8, 20.0  ;;  %710 = vst.msk [vmem:[#allocation2 + $0x38] sm:$0xff] %vm261_vm2, %v677_v12  ;;  %726 = vst.msk [vmem:[#allocation2 + $0xb8] sm:$0xff] %vm261_vm2, %v693_v13  ;;  %v675_v36 = vadd.f32 %v562_v24, %v299_v23 }
  0xe9   : > { %v909_v15 = vmul.f32 1.442695, %v859_v7  ;;  %v2187_v17 = vadd.f32 %v2161_v49, %v757_v11  ;;  %v857_v19 = vmin.f32 %v2181_v9, 20.0  ;;  %v739_v20 = vld [vmem:[#allocation2 + $0x8] sm:$0xff]  ;;  %v1745_v57 = vpop.f32.mrf.mxu0  ;;  %v1761_v63 = vpop.f32.mrf.mxu1  ;;  %v691_v2 = vadd.f32 %v626_v45, %v315_v55 }
  0xea   : > { %v755_v21 = vld [vmem:[#allocation2 + $0x88] sm:$0xff]  ;;  %1815 = vpow2.f32 %v877_v14  ;;  %v844_v22 = vmin.f32 %v2184_v16, 20.0  ;;  %v873_v25 = vmul.f32 1.442695, %v841_v18  ;;  %v2196_v30 = vadd.f32 %v2161_v49, %v739_v20  ;;  %708 = vst.msk [vmem:[#allocation2 + $0x28] sm:$0xff] %vm261_vm2, %v675_v36 }
  0xeb   : > { %1817 = vpow2.f32 %v909_v15  ;;  %v905_v26 = vmul.f32 1.442695, %v857_v19  ;;  %v860_v27 = vmin.f32 %v2187_v17, 20.0  ;;  %v744_v28 = vld [vmem:[#allocation2 + $0x30] sm:$0xff]  ;;  %v2199_v31 = vadd.f32 %v2161_v49, %v755_v21  ;;  %724 = vst.msk [vmem:[#allocation2 + $0xa8] sm:$0xff] %vm261_vm2, %v691_v2 }
  0xec   : > { %v879_v29 = vmul.f32 1.442695, %v844_v22  ;;  %v2202_v32 = vadd.f32 %v2161_v49, %v744_v28  ;;  %v760_v33 = vld [vmem:[#allocation2 + $0xb0] sm:$0xff]  ;;  %1819 = vpow2.f32 %v873_v25  ;;  %v842_v37 = vmin.f32 %v2196_v30, 20.0 }
  0xed   : > { %v911_v34 = vmul.f32 1.442695, %v860_v27  ;;  %v2205_v35 = vadd.f32 %v2161_v49, %v760_v33  ;;  %1821 = vpow2.f32 %v905_v26  ;;  %v742_v38 = vld [vmem:[#allocation2 + $0x20] sm:$0xff]  ;;  %v858_v40 = vmin.f32 %v2199_v31, 20.0 }
  0xee   : > { %v758_v39 = vld [vmem:[#allocation2 + $0xa0] sm:$0xff]  ;;  %1823 = vpow2.f32 %v879_v29  ;;  %v847_v41 = vmin.f32 %v2202_v32, 20.0  ;;  %v875_v42 = vmul.f32 1.442695, %v842_v37  ;;  %v2213_v48 = vadd.f32 %v2161_v49, %v742_v38 }
  0xef   : > { %1825 = vpow2.f32 %v911_v34  ;;  %v863_v43 = vmin.f32 %v2205_v35, 20.0  ;;  %v745_v44 = vld [vmem:[#allocation2 + $0x38] sm:$0xff]  ;;  %v907_v46 = vmul.f32 1.442695, %v858_v40  ;;  %v2216_v50 = vadd.f32 %v2161_v49, %v758_v39 }
  0xf0   : > { %v885_v47 = vmul.f32 1.442695, %v847_v41  ;;  %v761_v51 = vld [vmem:[#allocation2 + $0xb8] sm:$0xff]  ;;  %1827 = vpow2.f32 %v875_v42  ;;  %v2219_v52 = vadd.f32 %v2161_v49, %v745_v44  ;;  %v845_v54 = vmin.f32 %v2213_v48, 20.0 }
  0xf1   : > { %1829 = vpow2.f32 %v907_v46  ;;  %v917_v53 = vmul.f32 1.442695, %v863_v43  ;;  %v861_v58 = vmin.f32 %v2216_v50, 20.0  ;;  %v2224_v59 = vadd.f32 %v2161_v49, %v761_v51  ;;  %v743_v21 = vld [vmem:[#allocation2 + $0x28] sm:$0xff] }
  0xf2   : > { %1831 = vpow2.f32 %v885_v47  ;;  %v881_v0 = vmul.f32 1.442695, %v845_v54  ;;  %v848_v1 = vmin.f32 %v2219_v52, 20.0  ;;  %v680_v3 = vadd.f32 %v1745_v57, %v304_v56 }
  0xf3   : > { %1833 = vpow2.f32 %v917_v53  ;;  %v696_v5 = vadd.f32 %v1761_v63, %v320_v62  ;;  %v913_v10 = vmul.f32 1.442695, %v861_v58  ;;  %v864_v11 = vmin.f32 %v2224_v59, 20.0 }
  0xf4   : > { %713 = vst.msk [vmem:[#allocation2 + $0x50] sm:$0xff] %vm261_vm2, %v680_v3  ;;  %1835 = vpow2.f32 %v881_v0  ;;  %v887_v14 = vmul.f32 1.442695, %v848_v1  ;;  %v2236_v34 = vadd.f32 %v2161_v49, %v743_v21  ;;  %vm809_vm9 = vcmp.gt.f32.partialorder %v2178_v8, 20.0 }
  0xf5   : > { %729 = vst.msk [vmem:[#allocation2 + $0xd0] sm:$0xff] %vm261_vm2, %v696_v5  ;;  %v2231_v24 = vmul.f32 1.442695, %v864_v11  ;;  %vm825_vm11 = vcmp.gt.f32.partialorder %v2181_v9, 20.0  ;;  %vm812_vm13 = vcmp.gt.f32.partialorder %v2184_v16, 20.0  ;;  %vm828_vm15 = vcmp.gt.f32.partialorder %v2187_v17, 20.0 }
  0xf6   : > { %vm810_vm1 = vcmp.gt.f32.partialorder %v2196_v30, 20.0 }
  0xf7   : > { %v1816_v4 = vpop.eup %1815 }
  0xf8   : > { %v1818_v6 = vpop.eup %1817  ;;  %v955_v7 = vadd.f32 1.0, %v1816_v4  ;;  %v958_v18 = vmul.f32 -0.5, %v1816_v4  ;;  %v961_v26 = vand.u32 2147483647, %v1816_v4 }
  0xf9   : > { %v1099_v12 = vadd.f32 1.0, %v1818_v6  ;;  %v1820_v13 = vpop.eup %1819  ;;  %v1102_v19 = vmul.f32 -0.5, %v1818_v6  ;;  %v1105_v29 = vand.u32 2147483647, %v1818_v6 }
  0xfa   : > { %1837 = vlog2.f32 %v955_v7  ;;  %v1822_v15 = vpop.eup %1821  ;;  %v937_v20 = vadd.f32 1.0, %v1820_v13  ;;  %v940_v27 = vmul.f32 -0.5, %v1820_v13  ;;  %v959_v37 = vadd.f32 1.0, %v958_v18 }
  0xfb   : > { %1839 = vlog2.f32 %v1099_v12  ;;  %v1824_v22 = vpop.eup %1823  ;;  %v1081_v23 = vadd.f32 1.0, %v1822_v15  ;;  %v1084_v28 = vmul.f32 -0.5, %v1822_v15  ;;  %v1103_v38 = vadd.f32 1.0, %v1102_v19 }
  0xfc   : > { %1841 = vpow2.f32 %v913_v10  ;;  %v2233_v25 = vpop.eup %1825  ;;  %v964_v33 = vadd.f32 1.0, %v1824_v22  ;;  %v967_v39 = vmul.f32 -0.5, %v1824_v22  ;;  %v943_v41 = vand.u32 2147483647, %v1820_v13 }
  0xfd   : > { %1843 = vlog2.f32 %v937_v20  ;;  %v2238_v36 = vpop.eup %1827  ;;  %v1108_v42 = vadd.f32 1.0, %v2233_v25  ;;  %v1111_v43 = vmul.f32 -0.5, %v2233_v25  ;;  %vm2244_vm4 = vcmp.lt.f32.partialorder %v961_v26, 0.0004427343 }
  0xfe   : > { %1845 = vlog2.f32 %v1081_v23  ;;  %v2240_v40 = vpop.eup %1829  ;;  %v941_v45 = vadd.f32 1.0, %v940_v27  ;;  %v1085_v46 = vadd.f32 1.0, %v1084_v28  ;;  %v1087_v47 = vand.u32 2147483647, %v1822_v15 }
  0xff   : > { %1847 = vpow2.f32 %v887_v14  ;;  %v2248_v51 = vpop.eup %1831  ;;  %vm2251_vm6 = vcmp.lt.f32.partialorder %v1105_v29, 0.0004427343  ;;  %v968_v54 = vadd.f32 1.0, %v967_v39  ;;  %v946_v55 = vadd.f32 1.0, %v2238_v36 }
 0x100   : > { %1849 = vlog2.f32 %v964_v33  ;;  %v949_v56 = vmul.f32 -0.5, %v2238_v36  ;;  %v960_v57 = vmul.f32 %v1816_v4, %v959_v37  ;;  %v1104_v58 = vmul.f32 %v1818_v6, %v1103_v38  ;;  %v2259_v0 = vpop.eup %1833 }
 0x101   : > { %1851 = vlog2.f32 %v1108_v42  ;;  %v970_v62 = vand.u32 2147483647, %v1824_v22  ;;  %v1090_v63 = vadd.f32 1.0, %v2240_v40  ;;  %vm2261_vm8 = vcmp.lt.f32.partialorder %v943_v41, 0.0004427343  ;;  %v2273_v10 = vpop.eup %1835 }
 0x102   : > { %v1112_v2 = vadd.f32 1.0, %v1111_v43  ;;  %1853 = vlog2.f32 %v946_v55  ;;  %v1093_v3 = vmul.f32 -0.5, %v2240_v40  ;;  %vm2267_vm10 = vcmp.lt.f32.partialorder %v1087_v47, 0.0004427343 }
 0x103   : > { %v1114_v5 = vand.u32 2147483647, %v2233_v25  ;;  %v950_v6 = vadd.f32 1.0, %v949_v56  ;;  %1855 = vlog2.f32 %v1090_v63  ;;  %v991_v7 = vadd.f32 1.0, %v2248_v51  ;;  %v2326_v63 = vpop.f32.mrf.mxu0 }
 0x104   : > { %v942_v11 = vmul.f32 %v1820_v13, %v941_v45  ;;  %v1086_v12 = vmul.f32 %v1822_v15, %v1085_v46  ;;  %v2276_v14 = vmul.f32 %v1824_v22, %v968_v54  ;;  %v994_v18 = vmul.f32 -0.5, %v2248_v51 }
 0x105   : > { %vm2279_vm12 = vcmp.lt.f32.partialorder %v970_v62, 0.0004427343  ;;  %v952_v21 = vand.u32 2147483647, %v2238_v36  ;;  %1857 = vlog2.f32 %v991_v7  ;;  %v1135_v23 = vadd.f32 1.0, %v2259_v0 }
 0x106   : > { %v1138_v26 = vmul.f32 -0.5, %v2259_v0  ;;  %v2288_v15 = vmul.f32 %v2233_v25, %v1112_v2  ;;  %v1094_v22 = vadd.f32 1.0, %v1093_v3  ;;  %v1096_v28 = vand.u32 2147483647, %v2240_v40 }
 0x107   : > { %v1838_v19 = vpop.eup %1837  ;;  %vm2293_vm14 = vcmp.lt.f32.partialorder %v1114_v5, 0.0004427343  ;;  %v2298_v38 = vmul.f32 %v2238_v36, %v950_v6  ;;  %v995_v39 = vadd.f32 1.0, %v994_v18  ;;  %1859 = vlog2.f32 %v1135_v23 }
 0x108   : > { %v1840_v13 = vpop.eup %1839  ;;  %v957_v27 = vmul.f32 0.6931472, %v1838_v19  ;;  %v997_v42 = vand.u32 2147483647, %v2248_v51  ;;  %v1139_v43 = vadd.f32 1.0, %v1138_v26  ;;  %v973_v45 = vadd.f32 1.0, %v2273_v10  ;;  %v2351_v26 = vpop.f32.mrf.mxu1 }
 0x109   : > { %v2291_v29 = vpop.eup %1841  ;;  %v1101_v33 = vmul.f32 0.6931472, %v1840_v13  ;;  %vm2310_vm0 = vcmp.lt.f32.partialorder %v952_v21, 0.0004427343  ;;  %v976_v44 = vmul.f32 -0.5, %v2273_v10  ;;  %v1095_v53 = vmul.f32 %v2240_v40, %v1094_v22  ;;  %v2353_v13 = vpop.f32.mrf.mxu0 }
 0x10a   : > { %v1844_v41 = vpop.eup %1843  ;;  %v963_v25 = vsel %vm2244_vm4, %v960_v57, %v957_v27  ;;  %vm2322_vm3 = vcmp.lt.f32.partialorder %v1096_v28, 0.0004427343  ;;  %vm826_vm4 = vcmp.gt.f32.partialorder %v2199_v31, 20.0  ;;  %v996_v5 = vmul.f32 %v2248_v51, %v995_v39 }
 0x10b   : > { %v1846_v46 = vpop.eup %1845  ;;  %v1227_v47 = vsel %vm811_vm5, %v2166_v60, %v963_v25  ;;  %v1107_v36 = vsel %vm2251_vm6, %v1104_v58, %v1101_v33  ;;  %v939_v54 = vmul.f32 0.6931472, %v1844_v41  ;;  %v1141_v6 = vand.u32 2147483647, %v2259_v0 }
 0x10c   : > { %v2315_v56 = vpop.eup %1847  ;;  %1861 = vtanh.f32 %v1227_v47  ;;  %v1243_v57 = vsel %vm827_vm7, %v2169_v61, %v1107_v36  ;;  %v1083_v62 = vmul.f32 0.6931472, %v1846_v46  ;;  %vm2338_vm5 = vcmp.lt.f32.partialorder %v997_v42, 0.0004427343  ;;  %v2379_v47 = vpop.f32.mrf.mxu1 }
 0x10d   : > { %v1850_v2 = vpop.eup %1849  ;;  %1863 = vtanh.f32 %v1243_v57  ;;  %v945_v3 = vsel %vm2261_vm8, %v942_v11, %v939_v54  ;;  %vm815_vm6 = vcmp.gt.f32.partialorder %v2202_v32, 20.0  ;;  %v1140_v11 = vmul.f32 %v2259_v0, %v1139_v43  ;;  %v2381_v36 = vpop.f32.mrf.mxu0 }
 0x10e   : > { %v1225_v40 = vsel %vm809_vm9, %v2178_v8, %v945_v3  ;;  %v1089_v7 = vsel %vm2267_vm10, %v1086_v12, %v1083_v62  ;;  %v966_v18 = vmul.f32 0.6931472, %v1850_v2  ;;  %1865 = vlog2.f32 %v973_v45  ;;  %v1852_v1 = vpop.eup %1851 }
 0x10f   : > { %1867 = vtanh.f32 %v1225_v40  ;;  %v1241_v51 = vsel %vm825_vm11, %v2181_v9, %v1089_v7  ;;  %v977_v21 = vadd.f32 1.0, %v976_v44  ;;  %v1110_v12 = vmul.f32 0.6931472, %v1852_v1  ;;  %v1854_v27 = vpop.eup %1853 }
 0x110   : > { %1869 = vtanh.f32 %v1241_v51  ;;  %v972_v4 = vsel %vm2279_vm12, %v2276_v14, %v966_v18  ;;  %v1117_v23 = vadd.f32 1.0, %v2291_v29  ;;  %vm831_vm7 = vcmp.gt.f32.partialorder %v2205_v35, 20.0  ;;  %v1856_v28 = vpop.eup %1855  ;;  %v2409_v51 = vpop.f32.mrf.mxu1 }
 0x111   : > { %v1228_v22 = vsel %vm812_vm13, %v2184_v16, %v972_v4  ;;  %vm2359_vm8 = vcmp.lt.f32.partialorder %v1141_v6, 0.0004427343  ;;  %v979_v14 = vand.u32 2147483647, %v2273_v10  ;;  %v1120_v20 = vmul.f32 -0.5, %v2291_v29  ;;  %v748_v6 = vld [vmem:[#allocation2 + $0x50] sm:$0xff] }
 0x112   : > { %1871 = vtanh.f32 %v1228_v22  ;;  %v1116_v33 = vsel %vm2293_vm14, %v2288_v15, %v1110_v12  ;;  %v948_v39 = vmul.f32 0.6931472, %v1854_v27  ;;  %v1003_v41 = vmul.f32 -0.5, %v2315_v56  ;;  %v1858_v45 = vpop.eup %1857  ;;  %v307_v22 = vld [vmem:[#allocation2 + $0x68] sm:$0xff] }
 0x113   : > { %vm1449_vm9 = vcmask 519168   ;;  %v1244_v25 = vsel %vm828_vm15, %v2187_v17, %v1116_v33  ;;  %v1092_v42 = vmul.f32 0.6931472, %v1856_v28  ;;  %v2373_v43 = vmul.f32 %v2273_v10, %v977_v21  ;;  %v2411_v21 = vpop.f32.mrf.mxu0  ;;  %v302_v33 = vld [vmem:[#allocation2 + $0x40] sm:$0xff] }
 0x114   : > { %1873 = vlog2.f32 %v1117_v23  ;;  %v954_v37 = vsel %vm2310_vm0, %v2298_v38, %v948_v39  ;;  %v1121_v15 = vadd.f32 1.0, %v1120_v20  ;;  %v1000_v46 = vadd.f32 1.0, %v2315_v56  ;;  %v759_v38 = vld [vmem:[#allocation2 + $0xa8] sm:$0xff]  ;;  %v1860_v55 = vpop.eup %1859 }
 0x115   : > { %1875 = vtanh.f32 %v1244_v25  ;;  %v1226_v54 = vsel %vm810_vm1, %v2196_v30, %v954_v37  ;;  %v1098_v10 = vsel %vm2322_vm3, %v1095_v53, %v1092_v42  ;;  %v993_v44 = vmul.f32 0.6931472, %v1858_v45  ;;  %v2442_v42 = vpop.f32.mrf.mxu1  ;;  %v2444_v45 = vpop.f32.mrf.mxu0 }
 0x116   : > { %vm2388_vm10 = vcmp.lt.f32.partialorder %v979_v14, 0.0004427343  ;;  %1877 = vtanh.f32 %v1226_v54  ;;  %v1242_v62 = vsel %vm826_vm4, %v2199_v31, %v1098_v10  ;;  %vm813_vm11 = vcmp.gt.f32.partialorder %v2213_v48, 20.0 }
 0x117   : > { %v1123_v2 = vand.u32 2147483647, %v2291_v29  ;;  %v1004_v3 = vadd.f32 1.0, %v1003_v41  ;;  %1879 = vtanh.f32 %v1242_v62  ;;  %v999_v53 = vsel %vm2338_vm5, %v996_v5, %v993_v44  ;;  %v305_v62 = vld [vmem:[#allocation2 + $0x58] sm:$0xff] }
 0x118   : > { %v1137_v58 = vmul.f32 0.6931472, %v1860_v55  ;;  %v846_v40 = vmin.f32 %v2236_v34, 20.0  ;;  %v1231_v7 = vsel %vm815_vm6, %v2202_v32, %v999_v53  ;;  %v2404_v18 = vmul.f32 %v2291_v29, %v1121_v15  ;;  %v318_v55 = vld [vmem:[#allocation2 + $0xc0] sm:$0xff] }
 0x119   : > { %1881 = vlog2.f32 %v1000_v46  ;;  %v2407_v1 = vadd.f32 %v2161_v49, %v759_v38  ;;  %v1862_v5 = vpop.eup %1861  ;;  %v2416_v12 = vadd.f32 %v2161_v49, %v748_v6  ;;  %vm2422_vm12 = vcmp.lt.f32.partialorder %v1123_v2, 0.0004427343 }
 0x11a   : > { %1883 = vtanh.f32 %v1231_v7  ;;  %v1143_v19 = vsel %vm2359_vm8, %v1140_v11, %v1137_v58  ;;  %v883_v4 = vmul.f32 1.442695, %v846_v40  ;;  %v1864_v29 = vpop.eup %1863  ;;  %v1291_v23 = vmul.f32 %v1862_v5, %v2166_v60  ;;  %v764_v11 = vld [vmem:[#allocation2 + $0xd0] sm:$0xff]  ;;  %v303_v58 = vld [vmem:[#allocation2 + $0x48] sm:$0xff]  ;;  %v655_v5 = vpop.f32.mrf.mxu1 }
 0x11b   : > { %v1247_v27 = vsel %vm831_vm7, %v2205_v35, %v1143_v19  ;;  %v2427_v14 = vmul.f32 %v2315_v56, %v1004_v3  ;;  %1885 = vpow2.f32 %v2231_v24  ;;  %v1866_v0 = vpop.eup %1865  ;;  %v1307_v60 = vmul.f32 %v1864_v29, %v2169_v61  ;;  %v319_v40 = vld [vmem:[#allocation2 + $0xc8] sm:$0xff]  ;;  %v308_v7 = vld [vmem:[#allocation2 + $0x70] sm:$0xff]  ;;  %v1750_v19 = vpop.f32.mrf.mxu0 }
 0x11c   : > { %1887 = vtanh.f32 %v1247_v27  ;;  %vm829_vm13 = vcmp.gt.f32.partialorder %v2216_v50, 20.0  ;;  %v1006_v20 = vand.u32 2147483647, %v2315_v56  ;;  %v862_v28 = vmin.f32 %v2407_v1, 20.0  ;;  %v1868_v24 = vpop.eup %1867 }
 0x11d   : > { %v1683_v39 = vpack.c.bf16 %v1291_v23, %v1291_v23  ;;  %v975_v41 = vmul.f32 0.6931472, %v1866_v0  ;;  %1889 = vpow2.f32 %v883_v4  ;;  %v851_v25 = vmin.f32 %v2416_v12, 20.0  ;;  %v1870_v61 = vpop.eup %1869 }
 0x11e   : > { %v1699_v37 = vpack.c.bf16 %v1307_v60, %v1307_v60  ;;  %v1289_v15 = vmul.f32 %v1868_v24, %v2178_v8  ;;  %v915_v46 = vmul.f32 1.442695, %v862_v28  ;;  %v2448_v56 = vadd.f32 %v2161_v49, %v764_v11  ;;  %v306_v28 = vld [vmem:[#allocation2 + $0x60] sm:$0xff] }
 0x11f   : > { %1452 = vst.msk [vmem:[%s2435_s28 + $0x8] sm:$0xf] %vm1449_vm9, %v1683_v39  ;;  %v1305_v54 = vmul.f32 %v1870_v61, %v2181_v9  ;;  %v981_v10 = vsel %vm2388_vm10, %v2373_v43, %v975_v41  ;;  %v893_v44 = vmul.f32 1.442695, %v851_v25  ;;  %v678_v38 = vadd.f32 %v2326_v63, %v302_v33  ;;  %v1872_v2 = vpop.eup %1871  ;;  %v321_v43 = vld [vmem:[#allocation2 + $0xd8] sm:$0xff]  ;;  %v322_v39 = vld [vmem:[#allocation2 + $0xe0] sm:$0xff] }
 0x120   : > { %1468 = vst.msk [vmem:[%s2435_s28 + $0x48] sm:$0xf] %vm1449_vm9, %v1699_v37  ;;  %v1681_v8 = vpack.c.bf16 %v1289_v15, %v1289_v15  ;;  %v1229_v3 = vsel %vm813_vm11, %v2213_v48, %v981_v10  ;;  %vm2462_vm14 = vcmp.lt.f32.partialorder %v1006_v20, 0.0004427343  ;;  %1891 = vpow2.f32 %v915_v46  ;;  %v324_v20 = vld [vmem:[#allocation2 + $0xf0] sm:$0xff]  ;;  %v309_v41 = vld [vmem:[#allocation2 + $0x78] sm:$0xff] }
 0x121   : > { %v1874_v57 = vpop.eup %1873  ;;  %v1697_v6 = vpack.c.bf16 %v1305_v54, %v1305_v54  ;;  %v1292_v63 = vmul.f32 %v1872_v2, %v2184_v16  ;;  %1893 = vtanh.f32 %v1229_v3  ;;  %v867_v53 = vmin.f32 %v2448_v56, 20.0  ;;  %711 = vst.msk [vmem:[#allocation2 + $0x40] sm:$0xff] %vm261_vm2, %v678_v38 }
 0x122   : > { %v1876_v4 = vpop.eup %1875  ;;  %1450 = vst.msk [vmem:[%s2435_s28] sm:$0xf] %vm1449_vm9, %v1681_v8  ;;  %v1119_v29 = vmul.f32 0.6931472, %v1874_v57  ;;  %1895 = vpow2.f32 %v893_v44  ;;  %v694_v23 = vadd.f32 %v2351_v26, %v318_v55  ;;  %v681_v27 = vadd.f32 %v2353_v13, %v305_v62 }
 0x123   : > { %1466 = vst.msk [vmem:[%s2435_s28 + $0x40] sm:$0xf] %vm1449_vm9, %v1697_v6  ;;  %v1684_v16 = vpack.c.bf16 %v1292_v63, %v1292_v63  ;;  %v1308_v11 = vmul.f32 %v1876_v4, %v2187_v17  ;;  %v925_v0 = vmul.f32 1.442695, %v867_v53  ;;  %v697_v60 = vadd.f32 %v2379_v47, %v321_v43  ;;  %v1878_v33 = vpop.eup %1877 }
 0x124   : > { %v1125_v24 = vsel %vm2422_vm12, %v2404_v18, %v1119_v29  ;;  %727 = vst.msk [vmem:[#allocation2 + $0xc0] sm:$0xff] %vm261_vm2, %v694_v23  ;;  %714 = vst.msk [vmem:[#allocation2 + $0x58] sm:$0xff] %vm261_vm2, %v681_v27  ;;  %v679_v26 = vadd.f32 %v2381_v36, %v303_v58  ;;  %v695_v13 = vadd.f32 %v2409_v51, %v319_v40  ;;  %v1880_v47 = vpop.eup %1879  ;;  %v325_v36 = vld [vmem:[#allocation2 + $0xf8] sm:$0xff]  ;;  %v1766_v51 = vpop.f32.mrf.mxu1  ;;  %vm816_vm15 = vcmp.gt.f32.partialorder %v2219_v52, 20.0 }
 0x125   : > { %v684_v17 = vadd.f32 %v2411_v21, %v308_v7  ;;  %1453 = vst.msk [vmem:[%s2435_s28 + $0xc] sm:$0xf] %vm1449_vm9, %v1684_v16  ;;  %v1700_v25 = vpack.c.bf16 %v1308_v11, %v1308_v11  ;;  %v1290_v61 = vmul.f32 %v1878_v33, %v2196_v30  ;;  %v1245_v18 = vsel %vm829_vm13, %v2216_v50, %v1125_v24  ;;  %v594_v21 = vpop.f32.mrf.mxu0 }
 0x126   : > { %1897 = vpow2.f32 %v925_v0  ;;  %730 = vst.msk [vmem:[#allocation2 + $0xd8] sm:$0xff] %vm261_vm2, %v697_v60  ;;  %v1882_v37 = vpop.eup %1881  ;;  %v1306_v15 = vmul.f32 %v1880_v47, %v2199_v31  ;;  %712 = vst.msk [vmem:[#allocation2 + $0x48] sm:$0xff] %vm261_vm2, %v679_v26  ;;  %v700_v30 = vadd.f32 %v2442_v42, %v324_v20  ;;  %v682_v46 = vadd.f32 %v2444_v45, %v306_v28 }
 0x127   : > { %1899 = vtanh.f32 %v1245_v18  ;;  %728 = vst.msk [vmem:[#allocation2 + $0xc8] sm:$0xff] %vm261_vm2, %v695_v13  ;;  %717 = vst.msk [vmem:[#allocation2 + $0x70] sm:$0xff] %vm261_vm2, %v684_v17  ;;  %v1884_v54 = vpop.eup %1883  ;;  %v1682_v10 = vpack.c.bf16 %v1290_v61, %v1290_v61  ;;  %v1002_v44 = vmul.f32 0.6931472, %v1882_v37  ;;  %v698_v38 = vadd.f32 %v655_v5, %v322_v39 }
 0x128   : > { %1469 = vst.msk [vmem:[%s2435_s28 + $0x4c] sm:$0xf] %vm1449_vm9, %v1700_v25  ;;  %v685_v55 = vadd.f32 %v1750_v19, %v309_v41  ;;  %v2500_v31 = vpop.eup %1885  ;;  %v1698_v62 = vpack.c.bf16 %v1306_v15, %v1306_v15  ;;  %v1295_v2 = vmul.f32 %v1884_v54, %v2202_v32  ;;  %v746_v8 = vld [vmem:[#allocation2 + $0x40] sm:$0xff]  ;;  %v701_v42 = vadd.f32 %v1766_v51, %v325_v36 }
 0x129   : > { %733 = vst.msk [vmem:[#allocation2 + $0xf0] sm:$0xff] %vm261_vm2, %v700_v30  ;;  %715 = vst.msk [vmem:[#allocation2 + $0x60] sm:$0xff] %vm261_vm2, %v682_v46  ;;  %v683_v45 = vadd.f32 %v594_v21, %v307_v22  ;;  %v1888_v3 = vpop.eup %1887  ;;  %v1008_v43 = vsel %vm2462_vm14, %v2427_v14, %v1002_v44  ;;  %v1144_v57 = vadd.f32 1.0, %v2500_v31  ;;  %v2519_v58 = vadd.f32 %v2161_v49, %v746_v8 }
 0x12a   : > { %1451 = vst.msk [vmem:[%s2435_s28 + $0x4] sm:$0xf] %vm1449_vm9, %v1682_v10  ;;  %v1890_v32 = vpop.eup %1889  ;;  %1467 = vst.msk [vmem:[%s2435_s28 + $0x44] sm:$0xf] %vm1449_vm9, %v1698_v62  ;;  %v1687_v6 = vpack.c.bf16 %v1295_v2, %v1295_v2  ;;  %v1311_v63 = vmul.f32 %v1888_v3, %v2205_v35  ;;  %v1232_v53 = vsel %vm816_vm15, %v2219_v52, %v1008_v43  ;;  %v1147_v35 = vmul.f32 -0.5, %v2500_v31 }
 0x12b   : > { %731 = vst.msk [vmem:[#allocation2 + $0xe0] sm:$0xff] %vm261_vm2, %v698_v38  ;;  %718 = vst.msk [vmem:[#allocation2 + $0x78] sm:$0xff] %vm261_vm2, %v685_v55  ;;  %1901 = vtanh.f32 %v1232_v53  ;;  %v982_v14 = vadd.f32 1.0, %v1890_v32  ;;  %v762_v40 = vld [vmem:[#allocation2 + $0xc0] sm:$0xff]  ;;  %v849_v5 = vmin.f32 %v2519_v58, 20.0  ;;  %v985_v4 = vmul.f32 -0.5, %v1890_v32 }
 0x12c   : > { %734 = vst.msk [vmem:[#allocation2 + $0xf8] sm:$0xff] %vm261_vm2, %v701_v42  ;;  %716 = vst.msk [vmem:[#allocation2 + $0x68] sm:$0xff] %vm261_vm2, %v683_v45  ;;  %v1703_v9 = vpack.c.bf16 %v1311_v63, %v1311_v63  ;;  %1903 = vlog2.f32 %v1144_v57  ;;  %v1150_v16 = vand.u32 2147483647, %v2500_v31  ;;  %v2534_v11 = vadd.f32 %v2161_v49, %v762_v40  ;;  %v749_v17 = vld [vmem:[#allocation2 + $0x58] sm:$0xff] }
 0x12d   : > { %1456 = vst.msk [vmem:[%s2435_s28 + $0x18] sm:$0xf] %vm1449_vm9, %v1687_v6  ;;  %v1892_v7 = vpop.eup %1891  ;;  %1905 = vlog2.f32 %v982_v14  ;;  %v889_v20 = vmul.f32 1.442695, %v849_v5  ;;  %v1148_v33 = vadd.f32 1.0, %v1147_v35  ;;  %v986_v13 = vadd.f32 1.0, %v985_v4 }
 0x12e   : > { %v1894_v19 = vpop.eup %1893  ;;  %1472 = vst.msk [vmem:[%s2435_s28 + $0x58] sm:$0xf] %vm1449_vm9, %v1703_v9  ;;  %v1126_v29 = vadd.f32 1.0, %v1892_v7  ;;  %v1129_v0 = vmul.f32 -0.5, %v1892_v7  ;;  %v988_v24 = vand.u32 2147483647, %v1890_v32  ;;  %v2556_v15 = vadd.f32 %v2161_v49, %v749_v17 }
 0x12f   : > { %v2529_v23 = vpop.eup %1895  ;;  %v1293_v27 = vmul.f32 %v1894_v19, %v2213_v48  ;;  %v865_v48 = vmin.f32 %v2534_v11, 20.0  ;;  %vm2542_vm0 = vcmp.lt.f32.partialorder %v1150_v16, 0.0004427343  ;;  %v1132_v47 = vand.u32 2147483647, %v1892_v7  ;;  %v765_v61 = vld [vmem:[#allocation2 + $0xd8] sm:$0xff] }
 0x130   : > { %1907 = vlog2.f32 %v1126_v29  ;;  %v1027_v60 = vadd.f32 1.0, %v2529_v23  ;;  %vm832_vm1 = vcmp.gt.f32.partialorder %v2224_v59, 20.0  ;;  %v1130_v36 = vadd.f32 1.0, %v1129_v0  ;;  %v747_v22 = vld [vmem:[#allocation2 + $0x48] sm:$0xff]  ;;  %v752_v10 = vld [vmem:[#allocation2 + $0x70] sm:$0xff] }
 0x131   : > { %v1685_v28 = vpack.c.bf16 %v1293_v27, %v1293_v27  ;;  %v921_v51 = vmul.f32 1.442695, %v865_v48  ;;  %v1149_v21 = vmul.f32 %v2500_v31, %v1148_v33  ;;  %vm814_vm3 = vcmp.gt.f32.partialorder %v2236_v34, 20.0  ;;  %v768_v19 = vld [vmem:[#allocation2 + $0xf0] sm:$0xff] }
 0x132   : > { %1909 = vlog2.f32 %v1027_v60  ;;  %vm2551_vm4 = vcmp.lt.f32.partialorder %v988_v24, 0.0004427343  ;;  %v987_v46 = vmul.f32 %v1890_v32, %v986_v13  ;;  %v2559_v54 = vadd.f32 %v2161_v49, %v765_v61 }
 0x133   : > { %v2537_v26 = vpop.eup %1897  ;;  %1454 = vst.msk [vmem:[%s2435_s28 + $0x10] sm:$0xf] %vm1449_vm9, %v1685_v28  ;;  %1911 = vpow2.f32 %v889_v20  ;;  %vm2561_vm5 = vcmp.lt.f32.partialorder %v1132_v47, 0.0004427343  ;;  %v1030_v38 = vmul.f32 -0.5, %v2529_v23  ;;  %v852_v55 = vmin.f32 %v2556_v15, 20.0 }
 0x134   : > { %v1900_v39 = vpop.eup %1899  ;;  %v1171_v25 = vadd.f32 1.0, %v2537_v26  ;;  %v2568_v31 = vadd.f32 %v2161_v49, %v747_v22  ;;  %vm830_vm6 = vcmp.gt.f32.partialorder %v2407_v1, 20.0  ;;  %v1131_v2 = vmul.f32 %v1892_v7, %v1130_v36 }
 0x135   : > { %v1309_v18 = vmul.f32 %v1900_v39, %v2216_v50  ;;  %v763_v50 = vld [vmem:[#allocation2 + $0xc8] sm:$0xff]  ;;  %v1033_v8 = vand.u32 2147483647, %v2529_v23  ;;  %v868_v42 = vmin.f32 %v2559_v54, 20.0  ;;  %v895_v57 = vmul.f32 1.442695, %v852_v55 }
 0x136   : > { %1913 = vlog2.f32 %v1171_v25  ;;  %v2576_v45 = vadd.f32 %v2161_v49, %v763_v50  ;;  %v850_v32 = vmin.f32 %v2568_v31, 20.0  ;;  %v2581_v6 = vadd.f32 %v2161_v49, %v752_v10  ;;  %v750_v50 = vld [vmem:[#allocation2 + $0x60] sm:$0xff] }
 0x137   : > { %v1701_v30 = vpack.c.bf16 %v1309_v18, %v1309_v18  ;;  %1915 = vpow2.f32 %v921_v51  ;;  %v1174_v14 = vmul.f32 -0.5, %v2537_v26  ;;  %v927_v9 = vmul.f32 1.442695, %v868_v42  ;;  %v766_v10 = vld [vmem:[#allocation2 + $0xe0] sm:$0xff] }
 0x138   : > { %v1902_v62 = vpop.eup %1901  ;;  %v866_v40 = vmin.f32 %v2576_v45, 20.0  ;;  %1917 = vpow2.f32 %v895_v57  ;;  %v891_v5 = vmul.f32 1.442695, %v850_v32  ;;  %v1031_v4 = vadd.f32 1.0, %v1030_v38 }
 0x139   : > { %1470 = vst.msk [vmem:[%s2435_s28 + $0x50] sm:$0xf] %vm1449_vm9, %v1701_v30  ;;  %v1904_v3 = vpop.eup %1903  ;;  %v1296_v43 = vmul.f32 %v1902_v62, %v2219_v52  ;;  %1919 = vpow2.f32 %v927_v9  ;;  %v855_v60 = vmin.f32 %v2581_v6, 20.0  ;;  %v2599_v33 = vadd.f32 %v2161_v49, %v768_v19  ;;  %v2620_v62 = vld [vmem:[%s2842_s2] ss:$0 sm:$0xff] }
 0x13a   : > { %v1906_v63 = vpop.eup %1905  ;;  %v1146_v53 = vmul.f32 0.6931472, %v1904_v3  ;;  %v923_v29 = vmul.f32 1.442695, %v866_v40  ;;  %1921 = vpow2.f32 %v891_v5  ;;  %v1175_v13 = vadd.f32 1.0, %v1174_v14 }
 0x13b   : > { %v1688_v7 = vpack.c.bf16 %v1296_v43, %v1296_v43  ;;  %v984_v35 = vmul.f32 0.6931472, %v1906_v63  ;;  %v1177_v48 = vand.u32 2147483647, %v2537_v26  ;;  %v901_v17 = vmul.f32 1.442695, %v855_v60 }
 0x13c   : > { %v1152_v52 = vsel %vm2542_vm0, %v1149_v21, %v1146_v53  ;;  %v1032_v47 = vmul.f32 %v2529_v23, %v1031_v4  ;;  %vm1034_vm7 = vcmp.lt.f32.partialorder %v1033_v8, 0.0004427343  ;;  %v871_v49 = vmin.f32 %v2599_v33, 20.0 }
 0x13d   : > { %v1908_v27 = vpop.eup %1907  ;;  %1457 = vst.msk [vmem:[%s2435_s28 + $0x1c] sm:$0xf] %vm1449_vm9, %v1688_v7  ;;  %v1248_v16 = vsel %vm832_vm1, %v2224_v59, %v1152_v52  ;;  %v990_v0 = vsel %vm2551_vm4, %v987_v46, %v984_v35  ;;  %vm819_vm8 = vcmp.gt.f32.partialorder %v2416_v12, 20.0  ;;  %v1176_v37 = vmul.f32 %v2537_v26, %v1175_v13  ;;  %v751_v52 = vld [vmem:[#allocation2 + $0x68] sm:$0xff] }
 0x13e   : > { %1923 = vtanh.f32 %v1248_v16  ;;  %v1230_v20 = vsel %vm814_vm3, %v2236_v34, %v990_v0  ;;  %v1128_v28 = vmul.f32 0.6931472, %v1908_v27  ;;  %vm1178_vm10 = vcmp.lt.f32.partialorder %v1177_v48, 0.0004427343  ;;  %v753_v48 = vld [vmem:[#allocation2 + $0x78] sm:$0xff] }
 0x13f   : > { %v1910_v24 = vpop.eup %1909  ;;  %1925 = vtanh.f32 %v1230_v20  ;;  %v933_v46 = vmul.f32 1.442695, %v871_v49  ;;  %vm835_vm11 = vcmp.gt.f32.partialorder %v2448_v56, 20.0  ;;  %v2623_v26 = vadd.f32 %v2620_v62, %v750_v50 }
 0x140   : > { %v1134_v39 = vsel %vm2561_vm5, %v1131_v2, %v1128_v28  ;;  %v1029_v41 = vmul.f32 0.6931472, %v1910_v24  ;;  %1927 = vpow2.f32 %v923_v29  ;;  %v1912_v25 = vpop.eup %1911  ;;  %v2626_v2 = vadd.f32 %v2620_v62, %v766_v10 }
 0x141   : > { %v1246_v61 = vsel %vm830_vm6, %v2407_v1, %v1134_v39  ;;  %1929 = vpow2.f32 %v901_v17  ;;  %v1009_v51 = vadd.f32 1.0, %v1912_v25  ;;  %v1012_v38 = vmul.f32 -0.5, %v1912_v25 }
 0x142   : > { %1931 = vtanh.f32 %v1246_v61  ;;  %v1035_v36 = vsel %vm1034_vm7, %v1032_v47, %v1029_v41  ;;  %v1015_v42 = vand.u32 2147483647, %v1912_v25  ;;  %v853_v14 = vmin.f32 %v2623_v26, 20.0 }
 0x143   : > { %v1914_v18 = vpop.eup %1913  ;;  %v1235_v23 = vsel %vm819_vm8, %v2416_v12, %v1035_v36  ;;  %v1013_v43 = vadd.f32 1.0, %v1012_v38  ;;  %v869_v35 = vmin.f32 %v2626_v2, 20.0  ;;  %vm817_vm13 = vcmp.gt.f32.partialorder %v2519_v58, 20.0 }
 0x144   : > { %v2610_v22 = vpop.eup %1915  ;;  %v1173_v21 = vmul.f32 0.6931472, %v1914_v18  ;;  %1933 = vtanh.f32 %v1235_v23  ;;  %vm2638_vm12 = vcmp.lt.f32.partialorder %v1015_v42, 0.0004427343  ;;  %vm833_vm14 = vcmp.gt.f32.partialorder %v2534_v11, 20.0 }
 0x145   : > { %v1153_v30 = vadd.f32 1.0, %v2610_v22  ;;  %1935 = vlog2.f32 %v1009_v51  ;;  %v1918_v8 = vpop.eup %1917  ;;  %v1156_v57 = vmul.f32 -0.5, %v2610_v22  ;;  %v1159_v4 = vand.u32 2147483647, %v2610_v22  ;;  %v658_v51 = vpop.f32.mrf.mxu1 }
 0x146   : > { %v1179_v44 = vsel %vm1178_vm10, %v1176_v37, %v1173_v21  ;;  %v2628_v3 = vpop.eup %1919  ;;  %v1036_v32 = vadd.f32 1.0, %v1918_v8  ;;  %v1039_v40 = vmul.f32 -0.5, %v1918_v8  ;;  %v1014_v0 = vmul.f32 %v1912_v25, %v1013_v43 }
 0x147   : > { %v1251_v55 = vsel %vm835_vm11, %v2448_v56, %v1179_v44  ;;  %1937 = vlog2.f32 %v1153_v30  ;;  %v2631_v63 = vpop.eup %1921  ;;  %v1180_v53 = vadd.f32 1.0, %v2628_v3  ;;  %v1183_v29 = vmul.f32 -0.5, %v2628_v3 }
 0x148   : > { %1939 = vtanh.f32 %v1251_v55  ;;  %v1018_v7 = vadd.f32 1.0, %v2631_v63  ;;  %v1157_v60 = vadd.f32 1.0, %v1156_v57  ;;  %v1042_v28 = vand.u32 2147483647, %v1918_v8 }
 0x149   : > { %1941 = vpow2.f32 %v933_v46  ;;  %v897_v13 = vmul.f32 1.442695, %v853_v14  ;;  %v1186_v41 = vand.u32 2147483647, %v2628_v3  ;;  %v929_v47 = vmul.f32 1.442695, %v869_v35 }
 0x14a   : > { %1943 = vlog2.f32 %v1036_v32  ;;  %v1184_v61 = vadd.f32 1.0, %v1183_v29  ;;  %v1158_v36 = vmul.f32 %v2610_v22, %v1157_v60  ;;  %vm2660_vm15 = vcmp.lt.f32.partialorder %v1159_v4, 0.0004427343 }
 0x14b   : > { %v1924_v9 = vpop.eup %1923  ;;  %1945 = vlog2.f32 %v1180_v53  ;;  %v1021_v23 = vmul.f32 -0.5, %v2631_v63  ;;  %v2666_v21 = vadd.f32 %v2620_v62, %v753_v48  ;;  %vm2669_vm0 = vcmp.lt.f32.partialorder %v1042_v28, 0.0004427343 }
 0x14c   : > { %v1926_v5 = vpop.eup %1925  ;;  %v1312_v19 = vmul.f32 %v1924_v9, %v2224_v59  ;;  %1947 = vlog2.f32 %v1018_v7  ;;  %vm820_vm1 = vcmp.gt.f32.partialorder %v2556_v15, 20.0  ;;  %vm2674_vm3 = vcmp.lt.f32.partialorder %v1186_v41, 0.0004427343  ;;  %v769_v9 = vld [vmem:[#allocation2 + $0xf8] sm:$0xff] }
 0x14d   : > { %v2644_v27 = vpop.eup %1927  ;;  %v1294_v16 = vmul.f32 %v1926_v5, %v2236_v34  ;;  %v1040_v34 = vadd.f32 1.0, %v1039_v40  ;;  %vm836_vm4 = vcmp.gt.f32.partialorder %v2559_v54, 20.0  ;;  %v1185_v43 = vmul.f32 %v2628_v3, %v1184_v61 }
 0x14e   : > { %v2648_v59 = vpop.eup %1929  ;;  %v1704_v20 = vpack.c.bf16 %v1312_v19, %v1312_v19  ;;  %v1162_v24 = vadd.f32 1.0, %v2644_v27  ;;  %v1165_v38 = vmul.f32 -0.5, %v2644_v27  ;;  %vm818_vm5 = vcmp.gt.f32.partialorder %v2568_v31, 20.0 }
 0x14f   : > { %v1932_v17 = vpop.eup %1931  ;;  %v1686_v39 = vpack.c.bf16 %v1294_v16, %v1294_v16  ;;  %v1063_v49 = vadd.f32 1.0, %v2648_v59  ;;  %v1041_v10 = vmul.f32 %v1918_v8, %v1040_v34  ;;  %v1022_v53 = vadd.f32 1.0, %v1021_v23 }
 0x150   : > { %1473 = vst.msk [vmem:[%s2435_s28 + $0x5c] sm:$0xf] %vm1449_vm9, %v1704_v20  ;;  %v1310_v25 = vmul.f32 %v1932_v17, %v2407_v1  ;;  %1949 = vlog2.f32 %v1162_v24  ;;  %v1024_v14 = vand.u32 2147483647, %v2631_v63  ;;  %v1166_v19 = vadd.f32 1.0, %v1165_v38 }
 0x151   : > { %v1934_v18 = vpop.eup %1933  ;;  %1455 = vst.msk [vmem:[%s2435_s28 + $0x14] sm:$0xf] %vm1449_vm9, %v1686_v39  ;;  %1951 = vlog2.f32 %v1063_v49  ;;  %vm834_vm6 = vcmp.gt.f32.partialorder %v2576_v45, 20.0  ;;  %v1066_v29 = vmul.f32 -0.5, %v2648_v59  ;;  %v856_v16 = vmin.f32 %v2666_v21, 20.0 }
 0x152   : > { %v1936_v1 = vpop.eup %1935  ;;  %v1702_v37 = vpack.c.bf16 %v1310_v25, %v1310_v25  ;;  %v1299_v50 = vmul.f32 %v1934_v18, %v2416_v12  ;;  %1953 = vpow2.f32 %v897_v13  ;;  %v1023_v28 = vmul.f32 %v2631_v63, %v1022_v53 }
 0x153   : > { %v1011_v46 = vmul.f32 0.6931472, %v1936_v1  ;;  %1955 = vpow2.f32 %v929_v47  ;;  %vm2711_vm7 = vcmp.lt.f32.partialorder %v1024_v14, 0.0004427343  ;;  %v1069_v17 = vand.u32 2147483647, %v2648_v59 }
 0x154   : > { %v1938_v22 = vpop.eup %1937  ;;  %1471 = vst.msk [vmem:[%s2435_s28 + $0x54] sm:$0xf] %vm1449_vm9, %v1702_v37  ;;  %v1691_v12 = vpack.c.bf16 %v1299_v50, %v1299_v50  ;;  %v903_v39 = vmul.f32 1.442695, %v856_v16  ;;  %v2717_v34 = vadd.f32 %v2620_v62, %v751_v52  ;;  %v1167_v25 = vmul.f32 %v2644_v27, %v1166_v19 }
 0x155   : > { %v1940_v55 = vpop.eup %1939  ;;  %v1155_v42 = vmul.f32 0.6931472, %v1938_v22  ;;  %v1017_v32 = vsel %vm2638_vm12, %v1014_v0, %v1011_v46  ;;  %v2706_v0 = vadd.f32 %v2620_v62, %v769_v9  ;;  %v1067_v18 = vadd.f32 1.0, %v1066_v29 }
 0x156   : > { %v2683_v57 = vpop.eup %1941  ;;  %v1315_v8 = vmul.f32 %v1940_v55, %v2448_v56  ;;  %1460 = vst.msk [vmem:[%s2435_s28 + $0x28] sm:$0xf] %vm1449_vm9, %v1691_v12  ;;  %v1233_v3 = vsel %vm817_vm13, %v2519_v58, %v1017_v32  ;;  %v1168_v56 = vand.u32 2147483647, %v2644_v27  ;;  %v854_v22 = vmin.f32 %v2717_v34, 20.0 }
 0x157   : > { %v1161_v40 = vsel %vm2660_vm15, %v1158_v36, %v1155_v42  ;;  %v1207_v7 = vadd.f32 1.0, %v2683_v57  ;;  %1957 = vtanh.f32 %v1233_v3  ;;  %v1944_v4 = vpop.eup %1943  ;;  %v872_v63 = vmin.f32 %v2706_v0, 20.0  ;;  %v323_v36 = vld [vmem:[#allocation2 + $0xe8] sm:$0xff] }
 0x158   : > { %v1707_v35 = vpack.c.bf16 %v1315_v8, %v1315_v8  ;;  %v1249_v5 = vsel %vm833_vm14, %v2534_v11, %v1161_v40  ;;  %v1946_v60 = vpop.eup %1945  ;;  %v1038_v20 = vmul.f32 0.6931472, %v1944_v4  ;;  %vm1169_vm8 = vcmp.lt.f32.partialorder %v1168_v56, 0.0004427343 }
 0x159   : > { %1959 = vtanh.f32 %v1249_v5  ;;  %v1948_v13 = vpop.eup %1947  ;;  %v1182_v48 = vmul.f32 0.6931472, %v1946_v60  ;;  %v935_v37 = vmul.f32 1.442695, %v872_v63  ;;  %v699_v44 = vadd.f32 %v658_v51, %v323_v36 }
 0x15a   : > { %1476 = vst.msk [vmem:[%s2435_s28 + $0x68] sm:$0xf] %vm1449_vm9, %v1707_v35  ;;  %1961 = vlog2.f32 %v1207_v7  ;;  %v1044_v41 = vsel %vm2669_vm0, %v1041_v10, %v1038_v20  ;;  %v1020_v47 = vmul.f32 0.6931472, %v1948_v13  ;;  %v1210_v10 = vmul.f32 -0.5, %v2683_v57 }
 0x15b   : > { %v1236_v61 = vsel %vm820_vm1, %v2556_v15, %v1044_v41  ;;  %v1188_v49 = vsel %vm2674_vm3, %v1185_v43, %v1182_v48  ;;  %1963 = vpow2.f32 %v903_v39  ;;  %v1068_v42 = vmul.f32 %v2648_v59, %v1067_v18  ;;  %732 = vst.msk [vmem:[#allocation2 + $0xe8] sm:$0xff] %vm261_vm2, %v699_v44 }
 0x15c   : > { %1965 = vtanh.f32 %v1236_v61  ;;  %v1252_v1 = vsel %vm836_vm4, %v2559_v54, %v1188_v49  ;;  %v1026_v27 = vsel %vm2711_vm7, %v1023_v28, %v1020_v47  ;;  %vm823_vm10 = vcmp.gt.f32.partialorder %v2581_v6, 20.0 }
 0x15d   : > { %v1950_v23 = vpop.eup %1949  ;;  %1967 = vtanh.f32 %v1252_v1  ;;  %v1234_v50 = vsel %vm818_vm5, %v2568_v31, %v1026_v27  ;;  %vm1070_vm11 = vcmp.lt.f32.partialorder %v1069_v17, 0.0004427343  ;;  %v899_v9 = vmul.f32 1.442695, %v854_v22 }
 0x15e   : > { %v1164_v30 = vmul.f32 0.6931472, %v1950_v23  ;;  %v1952_v46 = vpop.eup %1951  ;;  %1969 = vtanh.f32 %v1234_v50  ;;  %v1211_v3 = vadd.f32 1.0, %v1210_v10  ;;  %v1213_v56 = vand.u32 2147483647, %v2683_v57 }
 0x15f   : > { %v2738_v38 = vpop.eup %1953  ;;  %v1065_v12 = vmul.f32 0.6931472, %v1952_v46  ;;  %1971 = vpow2.f32 %v935_v37  ;;  %vm839_vm12 = vcmp.gt.f32.partialorder %v2599_v33, 20.0  ;;  %vm821_vm14 = vcmp.gt.f32.partialorder %v2623_v26, 20.0 }
 0x160   : > { %v1170_v55 = vsel %vm1169_vm8, %v1167_v25, %v1164_v30  ;;  %v2741_v43 = vpop.eup %1955  ;;  %v1045_v32 = vadd.f32 1.0, %v2738_v38  ;;  %v1212_v29 = vmul.f32 %v2683_v57, %v1211_v3  ;;  %vm1214_vm2 = vcmp.lt.f32.partialorder %v1213_v56, 0.0004427343 }
 0x161   : > { %v1250_v8 = vsel %vm834_vm6, %v2576_v45, %v1170_v55  ;;  %v1071_v53 = vsel %vm1070_vm11, %v1068_v42, %v1065_v12  ;;  %v1189_v14 = vadd.f32 1.0, %v2741_v43  ;;  %v1048_v28 = vmul.f32 -0.5, %v2738_v38 }
 0x162   : > { %1973 = vtanh.f32 %v1250_v8  ;;  %v1239_v59 = vsel %vm823_vm10, %v2581_v6, %v1071_v53  ;;  %v767_v60 = vld [vmem:[#allocation2 + $0xe8] sm:$0xff]  ;;  %v1192_v39 = vmul.f32 -0.5, %v2741_v43  ;;  %v1051_v36 = vand.u32 2147483647, %v2738_v38 }
 0x163   : > { %1975 = vlog2.f32 %v1045_v32  ;;  %v2762_v24 = vadd.f32 %v2620_v62, %v767_v60  ;;  %v1049_v49 = vadd.f32 1.0, %v1048_v28  ;;  %vm837_vm0 = vcmp.gt.f32.partialorder %v2626_v2, 20.0 }
 0x164   : > { %v1958_v40 = vpop.eup %1957  ;;  %1977 = vtanh.f32 %v1239_v59  ;;  %vm1052_vm13 = vcmp.lt.f32.partialorder %v1051_v36, 0.0004427343  ;;  %vm824_vm3 = vcmp.gt.f32.partialorder %v2666_v21, 20.0  ;;  %vm840_vm5 = vcmp.gt.f32.partialorder %v2706_v0, 20.0 }
 0x165   : > { %v1297_v35 = vmul.f32 %v1958_v40, %v2519_v58  ;;  %1979 = vlog2.f32 %v1189_v14  ;;  %v870_v41 = vmin.f32 %v2762_v24, 20.0  ;;  %v1050_v22 = vmul.f32 %v2738_v38, %v1049_v49 }
 0x166   : > { %v1960_v7 = vpop.eup %1959  ;;  %1981 = vpow2.f32 %v899_v9  ;;  %vm822_vm7 = vcmp.gt.f32.partialorder %v2717_v34, 20.0  ;;  %vm838_vm10 = vcmp.gt.f32.partialorder %v2762_v24, 20.0 }
 0x167   : > { %v1962_v5 = vpop.eup %1961  ;;  %v1313_v19 = vmul.f32 %v1960_v7, %v2534_v11  ;;  %v1689_v52 = vpack.c.bf16 %v1297_v35, %v1297_v35  ;;  %v931_v18 = vmul.f32 1.442695, %v870_v41 }
 0x168   : > { %v1209_v4 = vmul.f32 0.6931472, %v1962_v5  ;;  %v2755_v20 = vpop.eup %1963 }
 0x169   : > { %v1705_v16 = vpack.c.bf16 %v1313_v19, %v1313_v19  ;;  %1458 = vst.msk [vmem:[%s2435_s28 + $0x20] sm:$0xf] %vm1449_vm9, %v1689_v52  ;;  %v1966_v11 = vpop.eup %1965  ;;  %v1072_v13 = vadd.f32 1.0, %v2755_v20  ;;  %v1075_v55 = vmul.f32 -0.5, %v2755_v20 }
 0x16a   : > { %v1215_v58 = vsel %vm1214_vm2, %v1212_v29, %v1209_v4  ;;  %v1968_v48 = vpop.eup %1967  ;;  %v1300_v17 = vmul.f32 %v1966_v11, %v2556_v15 }
 0x16b   : > { %1474 = vst.msk [vmem:[%s2435_s28 + $0x60] sm:$0xf] %vm1449_vm9, %v1705_v16  ;;  %v1255_v57 = vsel %vm839_vm12, %v2599_v33, %v1215_v58  ;;  %v1970_v47 = vpop.eup %1969  ;;  %v1316_v62 = vmul.f32 %v1968_v48, %v2559_v54  ;;  %v1193_v54 = vadd.f32 1.0, %v1192_v39  ;;  %v1076_v9 = vadd.f32 1.0, %v1075_v55 }
 0x16c   : > { %1983 = vtanh.f32 %v1255_v57  ;;  %v2772_v25 = vpop.eup %1971  ;;  %v1692_v63 = vpack.c.bf16 %v1300_v17, %v1300_v17  ;;  %v1298_v61 = vmul.f32 %v1970_v47, %v2568_v31  ;;  %v1195_v31 = vand.u32 2147483647, %v2741_v43 }
 0x16d   : > { %1985 = vlog2.f32 %v1072_v13  ;;  %v1708_v15 = vpack.c.bf16 %v1316_v62, %v1316_v62  ;;  %v1216_v51 = vadd.f32 1.0, %v2772_v25  ;;  %v1194_v8 = vmul.f32 %v2741_v43, %v1193_v54 }
 0x16e   : > { %1461 = vst.msk [vmem:[%s2435_s28 + $0x2c] sm:$0xf] %vm1449_vm9, %v1692_v63  ;;  %v1690_v1 = vpack.c.bf16 %v1298_v61, %v1298_v61  ;;  %1987 = vpow2.f32 %v931_v18  ;;  %vm1196_vm15 = vcmp.lt.f32.partialorder %v1195_v31, 0.0004427343  ;;  %v1219_v59 = vmul.f32 -0.5, %v2772_v25 }
 0x16f   : > { %v1974_v23 = vpop.eup %1973  ;;  %1477 = vst.msk [vmem:[%s2435_s28 + $0x6c] sm:$0xf] %vm1449_vm9, %v1708_v15  ;;  %1989 = vlog2.f32 %v1216_v51  ;;  %v1078_v43 = vand.u32 2147483647, %v2755_v20  ;;  %v1077_v35 = vmul.f32 %v2755_v20, %v1076_v9  ;;  %v1222_v52 = vand.u32 2147483647, %v2772_v25 }
 0x170   : > { %v1976_v27 = vpop.eup %1975  ;;  %v1314_v37 = vmul.f32 %v1974_v23, %v2576_v45  ;;  %1459 = vst.msk [vmem:[%s2435_s28 + $0x24] sm:$0xf] %vm1449_vm9, %v1690_v1  ;;  %v1220_v5 = vadd.f32 1.0, %v1219_v59 }
 0x171   : > { %v1978_v50 = vpop.eup %1977  ;;  %v1047_v30 = vmul.f32 0.6931472, %v1976_v27  ;;  %vm1079_vm1 = vcmp.lt.f32.partialorder %v1078_v43, 0.0004427343  ;;  %vm1223_vm4 = vcmp.lt.f32.partialorder %v1222_v52, 0.0004427343 }
 0x172   : > { %v1980_v46 = vpop.eup %1979  ;;  %v1706_v10 = vpack.c.bf16 %v1314_v37, %v1314_v37  ;;  %v1303_v44 = vmul.f32 %v1978_v50, %v2581_v6  ;;  %v1221_v20 = vmul.f32 %v2772_v25, %v1220_v5 }
 0x173   : > { %v1982_v12 = vpop.eup %1981  ;;  %v1053_v45 = vsel %vm1052_vm13, %v1050_v22, %v1047_v30  ;;  %v1191_v42 = vmul.f32 0.6931472, %v1980_v46 }
 0x174   : > { %1475 = vst.msk [vmem:[%s2435_s28 + $0x64] sm:$0xf] %vm1449_vm9, %v1706_v10  ;;  %v1695_v32 = vpack.c.bf16 %v1303_v44, %v1303_v44  ;;  %v1237_v38 = vsel %vm821_vm14, %v2623_v26, %v1053_v45  ;;  %v1054_v53 = vadd.f32 1.0, %v1982_v12  ;;  %v1057_v16 = vmul.f32 -0.5, %v1982_v12 }
 0x175   : > { %1991 = vtanh.f32 %v1237_v38  ;;  %v1197_v6 = vsel %vm1196_vm15, %v1194_v8, %v1191_v42  ;;  %v1060_v48 = vand.u32 2147483647, %v1982_v12 }
 0x176   : > { %1464 = vst.msk [vmem:[%s2435_s28 + $0x38] sm:$0xf] %vm1449_vm9, %v1695_v32  ;;  %v1253_v14 = vsel %vm837_vm0, %v2626_v2, %v1197_v6  ;;  %1993 = vlog2.f32 %v1054_v53  ;;  %v1058_v57 = vadd.f32 1.0, %v1057_v16 }
 0x177   : > { %1995 = vtanh.f32 %v1253_v14  ;;  %vm1061_vm6 = vcmp.lt.f32.partialorder %v1060_v48, 0.0004427343 }
 0x178   : > { %v1059_v63 = vmul.f32 %v1982_v12, %v1058_v57 }
 0x179   : > { %v1984_v3 = vpop.eup %1983 }
 0x17a   : > { %v1986_v40 = vpop.eup %1985  ;;  %v1319_v56 = vmul.f32 %v1984_v3, %v2599_v33 }
 0x17b   : > { %v1074_v7 = vmul.f32 0.6931472, %v1986_v40  ;;  %v1988_v4 = vpop.eup %1987 }
 0x17c   : > { %v1711_v19 = vpack.c.bf16 %v1319_v56, %v1319_v56  ;;  %v1990_v60 = vpop.eup %1989  ;;  %v1198_v28 = vadd.f32 1.0, %v1988_v4  ;;  %v1201_v49 = vmul.f32 -0.5, %v1988_v4  ;;  %v1204_v51 = vand.u32 2147483647, %v1988_v4 }
 0x17d   : > { %v1080_v29 = vsel %vm1079_vm1, %v1077_v35, %v1074_v7  ;;  %v1218_v33 = vmul.f32 0.6931472, %v1990_v60 }
 0x17e   : > { %1480 = vst.msk [vmem:[%s2435_s28 + $0x78] sm:$0xf] %vm1449_vm9, %v1711_v19  ;;  %v1240_v58 = vsel %vm824_vm3, %v2666_v21, %v1080_v29  ;;  %vm1205_vm8 = vcmp.lt.f32.partialorder %v1204_v51, 0.0004427343 }
 0x17f   : > { %1997 = vtanh.f32 %v1240_v58  ;;  %v1224_v11 = vsel %vm1223_vm4, %v1221_v20, %v1218_v33 }
 0x180   : > { %1999 = vlog2.f32 %v1198_v28  ;;  %v1256_v13 = vsel %vm840_vm5, %v2706_v0, %v1224_v11 }
 0x181   : > { %2001 = vtanh.f32 %v1256_v13 }
 0x182   : > { %v1992_v17 = vpop.eup %1991 }
 0x183   : > { %v1994_v39 = vpop.eup %1993  ;;  %v1301_v41 = vmul.f32 %v1992_v17, %v2623_v26  ;;  %v1202_v26 = vadd.f32 1.0, %v1201_v49 }
 0x184   : > { %v1996_v47 = vpop.eup %1995  ;;  %v1056_v62 = vmul.f32 0.6931472, %v1994_v39 }
 0x185   : > { %v1693_v25 = vpack.c.bf16 %v1301_v41, %v1301_v41  ;;  %v1317_v61 = vmul.f32 %v1996_v47, %v2626_v2  ;;  %v1203_v27 = vmul.f32 %v1988_v4, %v1202_v26 }
 0x186   : > { %v1062_v18 = vsel %vm1061_vm6, %v1059_v63, %v1056_v62 }
 0x187   : > { %1462 = vst.msk [vmem:[%s2435_s28 + $0x30] sm:$0xf] %vm1449_vm9, %v1693_v25  ;;  %v1709_v15 = vpack.c.bf16 %v1317_v61, %v1317_v61  ;;  %v1238_v36 = vsel %vm822_vm7, %v2717_v34, %v1062_v18 }
 0x188   : > { %2003 = vtanh.f32 %v1238_v36 }
 0x189   : > { %1478 = vst.msk [vmem:[%s2435_s28 + $0x70] sm:$0xf] %vm1449_vm9, %v1709_v15 }
 0x18c   : > { %v1998_v23 = vpop.eup %1997 }
 0x18d   : > { %v2000_v1 = vpop.eup %1999  ;;  %v1304_v2 = vmul.f32 %v1998_v23, %v2666_v21 }
 0x18e   : > { %v1200_v54 = vmul.f32 0.6931472, %v2000_v1  ;;  %v2002_v31 = vpop.eup %2001 }
 0x18f   : > { %v1696_v37 = vpack.c.bf16 %v1304_v2, %v1304_v2  ;;  %v1320_v30 = vmul.f32 %v2002_v31, %v2706_v0 }
 0x190   : > { %v1206_v50 = vsel %vm1205_vm8, %v1203_v27, %v1200_v54 }
 0x191   : > { %1465 = vst.msk [vmem:[%s2435_s28 + $0x3c] sm:$0xf] %vm1449_vm9, %v1696_v37  ;;  %v1254_v22 = vsel %vm838_vm10, %v2762_v24, %v1206_v50  ;;  %v1712_v46 = vpack.c.bf16 %v1320_v30, %v1320_v30 }
 0x192   : > { %2005 = vtanh.f32 %v1254_v22 }
 0x193   : > { %1481 = vst.msk [vmem:[%s2435_s28 + $0x7c] sm:$0xf] %vm1449_vm9, %v1712_v46 }
 0x195   : > { %v2004_v21 = vpop.eup %2003 }
 0x196   : > { %v1302_v10 = vmul.f32 %v2004_v21, %v2717_v34 }
 0x198   : > { %v1694_v44 = vpack.c.bf16 %v1302_v10, %v1302_v10 }
 0x19a   : > { %1463 = vst.msk [vmem:[%s2435_s28 + $0x34] sm:$0xf] %vm1449_vm9, %v1694_v44 }
 0x19f   : > { %v2006_v55 = vpop.eup %2005 }
 0x1a0   : > { %v1318_v12 = vmul.f32 %v2006_v55, %v2762_v24 }
 0x1a2   : > { %v1710_v45 = vpack.c.bf16 %v1318_v12, %v1318_v12 }
 0x1a4   : > { %1479 = vst.msk [vmem:[%s2435_s28 + $0x74] sm:$0xf] %vm1449_vm9, %v1710_v45 }
 0x1a5 PF: > { %s13_s14 = sadd.s32 1, %s2030_s14   ;;  %s2886_s12 = smov %s2026_s13 }
 0x1a6   : > { %p10_p5 = scmp.ge.s32.totalorder %s13_s14, 4   ;;  %s2887_s13 = smov %s2889_s15 }
 0x1a8   :  { %12 = sbr.rel (!%p10_p5) target bundleno = 2 (0x2), region = 76 }

</bundles_post_ra>
